<compile_context>
chip_gen: v5e
topology: v5e:2x2
jax: 0.10.0
libtpu: 0.0.40
codegen_flags: <defaults>
</compile_context>

<pallas_src>
import functools

import jax
import jax.numpy as jnp
from jax.experimental import pallas as pl
from jax.experimental.pallas import tpu as pltpu

_EPS = 1e-5


def _round_up(x, m):
    return ((x + m - 1) // m) * m


def _vmem_limit_bytes():
    """Per-generation scoped-VMEM limit (~80% of physical VMEM)."""
    cap = 64 * 1024 * 1024  # conservative fallback = v7x physical VMEM
    try:
        info = pltpu.get_tpu_info()
        cap = int(getattr(info, "vmem_capacity_bytes", cap) or cap)
    except Exception:
        pass
    return (cap * 4) // 5


_VMEM_LIMIT = _vmem_limit_bytes()
# Tile-footprint budget: leave headroom under the scoped limit for compiler
# internal scratch / semaphores.
_TILE_BUDGET = (_VMEM_LIMIT * 17) // 20
_TILE_CANDIDATES = (2048, 1024, 512, 256, 128)


def _hop_vmem_bytes(tm, tk, h_pad):
    return (2 * tm * tk * 2            # adj tile, bf16, double-buffered
            + 2 * tk * h_pad * 2       # x tile, bf16, double-buffered
            + 2 * h_pad * h_pad * 4    # W_hop, f32, double-buffered (constant idx)
            + 2 * h_pad * 4            # b_hop
            + tm * h_pad * 4           # f32 accumulator scratch
            + 2 * tm * h_pad * 4)      # out tile (f32 worst case), double-buffered


def _pick_hop_tiles(n_pad, h_pad, budget):
    """Largest (tm, tk) fitting the VMEM budget, minimizing modeled HBM traffic."""
    cands = [c for c in _TILE_CANDIDATES if c <= n_pad and n_pad % c == 0]
    if not cands:
        cands = [n_pad]
    can_split_rows = any(n_pad // c >= 2 for c in cands)
    best, best_cost = None, None
    for tm in cands:
        if can_split_rows and n_pad // tm < 2:
            continue  # keep the row grid >= 2 so v7x's 2nd TensorCore has work
        for tk in cands:
            if _hop_vmem_bytes(tm, tk, h_pad) > budget:
                continue
            steps = (n_pad // tm) * (n_pad // tk)
            # Modeled bytes/hop: adj stream + x re-stream + out store + per-step
            # pipeline overhead (~0.35 us ~= 350 KB of HBM at ~1 TB/s).
            cost = (n_pad * n_pad * 2
                    + (n_pad // tm) * n_pad * h_pad * 2
                    + n_pad * h_pad * 4
                    + steps * 350_000)
            if best_cost is None or cost < best_cost:
                best, best_cost = (tm, tk), cost
    if best is None:
        best = (cands[-1], cands[-1])
    return best


# --------------------------------------------------------------------------- #
# Kernel 1: input projection  x0 = relu(feat @ W_in + b_in), tiled over rows.
# --------------------------------------------------------------------------- #
def _proj_kernel(feat_ref, w_ref, b_ref, o_ref):
    y = jnp.dot(feat_ref[...], w_ref[...], preferred_element_type=jnp.float32)
    o_ref[...] = jnp.maximum(y + b_ref[...], 0.0).astype(o_ref.dtype)


def _project(feat, w_in, b_in, tm, out_dtype):
    n_pad, f = feat.shape
    h_pad = w_in.shape[1]
    return pl.pallas_call(
        _proj_kernel,
        out_shape=jax.ShapeDtypeStruct((n_pad, h_pad), out_dtype),
        grid_spec=pltpu.PrefetchScalarGridSpec(
            num_scalar_prefetch=0,
            grid=(n_pad // tm,),
            in_specs=[
                pl.BlockSpec((tm, f), lambda i: (i, 0)),
                pl.BlockSpec((f, h_pad), lambda i: (0, 0)),
                pl.BlockSpec((1, h_pad), lambda i: (0, 0)),
            ],
            out_specs=pl.BlockSpec((tm, h_pad), lambda i: (i, 0)),
        ),
        compiler_params=pltpu.CompilerParams(
            dimension_semantics=("parallel",),
            vmem_limit_bytes=_VMEM_LIMIT,
        ),
    )(feat, w_in, b_in)


# --------------------------------------------------------------------------- #
# Kernel 2: one message-passing hop  y = relu((adj @ x) @ W + b), tiled matmul.
# --------------------------------------------------------------------------- #
def _hop_kernel(adj_ref, x_ref, w_ref, b_ref, o_ref, acc_ref):
    k = pl.program_id(1)

    @pl.when(k == 0)
    def _():
        acc_ref[...] = jnp.zeros_like(acc_ref)

    # adj and x tiles are both bf16 (exact for 0/1 adj; x was already rounded to
    # bf16 at the previous store) -> full-rate MXU, f32 accumulation.
    acc_ref[...] += jnp.dot(adj_ref[...], x_ref[...],
                            preferred_element_type=jnp.float32)

    @pl.when(k == pl.num_programs(1) - 1)
    def _():
        y = jnp.dot(acc_ref[...], w_ref[...], preferred_element_type=jnp.float32)
        o_ref[...] = jnp.maximum(y + b_ref[...], 0.0).astype(o_ref.dtype)


def _hop(adj_bf16, x, w_hop, b_hop, tm, tk, out_dtype):
    n_pad = adj_bf16.shape[0]
    h_pad = x.shape[1]
    # TODO(synk): on v7x with large hidden, mark the constant-index w_ref/b_ref
    # specs with pipeline_mode=pl.Buffered(1) to drop their double-buffer VMEM
    # footprint (it is already accounted for in the tile-budget model above).
    return pl.pallas_call(
        _hop_kernel,
        out_shape=jax.ShapeDtypeStruct((n_pad, h_pad), out_dtype),
        grid_spec=pltpu.PrefetchScalarGridSpec(
            num_scalar_prefetch=0,
            grid=(n_pad // tm, n_pad // tk),
            in_specs=[
                pl.BlockSpec((tm, tk), lambda i, k: (i, k)),         # adj tile (bf16)
                pl.BlockSpec((tk, h_pad), lambda i, k: (k, 0)),      # x tile (bf16)
                pl.BlockSpec((h_pad, h_pad), lambda i, k: (0, 0)),   # W_hop[r]
                pl.BlockSpec((1, h_pad), lambda i, k: (0, 0)),       # b_hop[r]
            ],
            out_specs=pl.BlockSpec((tm, h_pad), lambda i, k: (i, 0)),
            scratch_shapes=[pltpu.VMEM((tm, h_pad), jnp.float32)],
        ),
        compiler_params=pltpu.CompilerParams(
            dimension_semantics=("parallel", "arbitrary"),
            vmem_limit_bytes=_VMEM_LIMIT,
        ),
    )(adj_bf16, x, w_hop, b_hop)


# --------------------------------------------------------------------------- #
# Kernel 3: fused BN1 + scatter_add pooling + BN2 + fc1 + ReLU.
# Single pass over node tiles; BN1 is folded into the pooled sums (linearity):
#   pooled = (sum_{n in g} x_n - count_g * mean) * invstd * gamma + count_g * beta
# --------------------------------------------------------------------------- #
def _pool_kernel(x_ref, idx_ref, g1_ref, be1_ref, g2_ref, be2_ref,
                 w_fc_ref, b_fc_ref, out_ref,
                 sum_ref, sumsq_ref, pooled_ref, count_ref,
                 *, num_nodes, num_graphs, tile_m):
    i = pl.program_id(0)

    @pl.when(i == 0)
    def _():
        sum_ref[...] = jnp.zeros_like(sum_ref)
        sumsq_ref[...] = jnp.zeros_like(sumsq_ref)
        pooled_ref[...] = jnp.zeros_like(pooled_ref)
        count_ref[...] = jnp.zeros_like(count_ref)

    x = x_ref[...].astype(jnp.float32)                              # (tm, Hp)

    # Mask rows that are padding (global row >= num_nodes).
    row = jax.lax.broadcasted_iota(jnp.int32, (tile_m, 1), 0) + i * tile_m
    valid = (row < num_nodes).astype(jnp.float32)                   # (tm, 1)
    x = x * valid

    sum_ref[...] += jnp.sum(x, axis=0, keepdims=True)               # (1, Hp)
    sumsq_ref[...] += jnp.sum(x * x, axis=0, keepdims=True)         # (1, Hp)

    # Per-tile one-hot scatter_add: (G, tm) @ (tm, Hp).  Padded idx == num_graphs
    # so padded rows never match any graph row.
    gids = jax.lax.broadcasted_iota(jnp.int32, (num_graphs, tile_m), 0)
    onehot = (gids == idx_ref[...]).astype(jnp.float32)             # (G, tm)
    pooled_ref[...] += jnp.dot(onehot, x, preferred_element_type=jnp.float32)
    count_ref[...] += jnp.sum(onehot, axis=1, keepdims=True)        # (G, 1)

    @pl.when(i == pl.num_programs(0) - 1)
    def _():
        inv_n = 1.0 / float(num_nodes)
        mean1 = sum_ref[...] * inv_n                                # (1, Hp)
        # NOTE: E[x^2] - mean^2 in f32; clamped at 0.  ReLU'd activations keep the
        # cancellation mild for typical N; a Welford combine would be exact.
        var1 = jnp.maximum(sumsq_ref[...] * inv_n - mean1 * mean1, 0.0)
        scale1 = jax.lax.rsqrt(var1 + _EPS) * g1_ref[...]           # (1, Hp)
        cnt = count_ref[...]                                        # (G, 1)
        pooled = (pooled_ref[...] - cnt * mean1) * scale1 + cnt * be1_ref[...]

        # BN2 over the graph dimension (training-mode batch stats).
        mean2 = jnp.mean(pooled, axis=0, keepdims=True)
        var2 = jnp.mean((pooled - mean2) ** 2, axis=0, keepdims=True)
        pooled = (pooled - mean2) * jax.lax.rsqrt(var2 + _EPS) * g2_ref[...] \
            + be2_ref[...]

        # fc1 + ReLU  (Dropout: eval-mode identity).
        out = jnp.dot(pooled, w_fc_ref[...], preferred_element_type=jnp.float32)
        out_ref[...] = jnp.maximum(out + b_fc_ref[...], 0.0)


def _pool_bn_fc(x, idx2d, g1, be1, g2, be2, w_fc, b_fc, *,
                num_nodes, num_graphs, tm):
    n_pad, h_pad = x.shape
    kernel = functools.partial(
        _pool_kernel, num_nodes=num_nodes, num_graphs=num_graphs, tile_m=tm)
    return pl.pallas_call(
        kernel,
        out_shape=jax.ShapeDtypeStruct((num_graphs, h_pad), jnp.float32),
        grid_spec=pltpu.PrefetchScalarGridSpec(
            num_scalar_prefetch=0,
            grid=(n_pad // tm,),
            in_specs=[
                pl.BlockSpec((tm, h_pad), lambda i: (i, 0)),   # x tile
                pl.BlockSpec((1, tm), lambda i: (0, i)),       # idx tile
                pl.BlockSpec((1, h_pad), lambda i: (0, 0)),    # bn1 gamma
                pl.BlockSpec((1, h_pad), lambda i: (0, 0)),    # bn1 beta
                pl.BlockSpec((1, h_pad), lambda i: (0, 0)),    # bn2 gamma
                pl.BlockSpec((1, h_pad), lambda i: (0, 0)),    # bn2 beta
                pl.BlockSpec((h_pad, h_pad), lambda i: (0, 0)),  # w_fc
                pl.BlockSpec((1, h_pad), lambda i: (0, 0)),    # b_fc
            ],
            out_specs=pl.BlockSpec((num_graphs, h_pad), lambda i: (0, 0)),
            scratch_shapes=[
                pltpu.VMEM((1, h_pad), jnp.float32),           # sum
                pltpu.VMEM((1, h_pad), jnp.float32),           # sumsq
                pltpu.VMEM((num_graphs, h_pad), jnp.float32),  # pooled
                pltpu.VMEM((num_graphs, 1), jnp.float32),      # count
            ],
        ),
        compiler_params=pltpu.CompilerParams(
            dimension_semantics=("arbitrary",),   # accumulators carry across tiles
            vmem_limit_bytes=_VMEM_LIMIT,
        ),
    )(x, idx2d, g1, be1, g2, be2, w_fc, b_fc)


# --------------------------------------------------------------------------- #
# Wrapper: pad N to a tile multiple and H to a lane multiple, run the kernels.
# --------------------------------------------------------------------------- #
def k_hop_graphnn_forward(adj, final_features, segment, idx, params, *,
                          radius, num_graphs):
    """Pallas implementation of k_hop_GraphNN.forward (segment unused, as in PyTorch)."""
    del segment  # unused in the reference forward
    n = adj.shape[0]
    h = params["w_fc"].shape[0]

    n_pad = _round_up(n, 128)
    h_pad = _round_up(h, 128)
    dh = h_pad - h
    tm, tk = _pick_hop_tiles(n_pad, h_pad, _TILE_BUDGET)

    # adj is 0/1 -> bf16 is lossless; cast BEFORE padding so the pad copy moves
    # 2 B/elem instead of 4.
    # TODO(synk): if adjacency is static across calls, cache adj_p outside jit.
    adj_p = jnp.pad(adj.astype(jnp.bfloat16), ((0, n_pad - n), (0, n_pad - n)))
    feat_p = jnp.pad(final_features.astype(jnp.float32), ((0, n_pad - n), (0, 0)))
    # Padded nodes get idx == num_graphs so they never hit a real graph row.
    idx_p = jnp.full((1, n_pad), num_graphs, dtype=jnp.int32)
    idx_p = idx_p.at[0, :n].set(idx.reshape(-1).astype(jnp.int32))

    # Zero-pad params along the hidden dim (padded lanes stay identically 0).
    pad2 = lambda a: jnp.pad(a.astype(jnp.float32).reshape(1, h), ((0, 0), (0, dh)))
    w_in = jnp.pad(params["w_in"].astype(jnp.float32), ((0, 0), (0, dh)))
    b_in = pad2(params["b_in"])
    w_hop = jnp.pad(params["w_hop"].astype(jnp.float32), ((0, 0), (0, dh), (0, dh)))
    b_hop = jnp.pad(params["b_hop"].astype(jnp.float32), ((0, 0), (0, dh)))
    g1, be1 = pad2(params["bn1_gamma"]), pad2(params["bn1_beta"])
    g2, be2 = pad2(params["bn2_gamma"]), pad2(params["bn2_beta"])
    w_fc = jnp.pad(params["w_fc"].astype(jnp.float32), ((0, dh), (0, dh)))
    b_fc = pad2(params["b_fc"])

    # MessagePassing: input projection + `radius` hops.  Intermediate x is stored
    # in bf16 (same values feed adj @ x, half the HBM/VMEM bytes); the final hop
    # output stays f32 so BN1 statistics keep full precision.
    x = _project(feat_p, w_in, b_in, tm,
                 out_dtype=jnp.bfloat16 if radius > 0 else jnp.float32)
    for r in range(radius):
        out_dtype = jnp.float32 if r == radius - 1 else jnp.bfloat16
        x = _hop(adj_p, x, w_hop[r], b_hop[r][None, :], tm, tk, out_dtype)

    out = _pool_bn_fc(x, idx_p, g1, be1, g2, be2, w_fc, b_fc,
                      num_nodes=n, num_graphs=num_graphs, tm=tm)
    return out[:, :h]


# --------------------------------------------------------------------------- #
# Parameter init (mirrors nn.Linear / nn.BatchNorm1d defaults) and reference.
# --------------------------------------------------------------------------- #
def init_params(key, input_dim, hidden_dim, radius):
    ks = jax.random.split(key, 6)
    s_in = 1.0 / jnp.sqrt(input_dim)
    s_h = 1.0 / jnp.sqrt(hidden_dim)
    return {
        "w_in": jax.random.uniform(ks[0], (input_dim, hidden_dim), jnp.float32, -s_in, s_in),
        "b_in": jax.random.uniform(ks[1], (1, hidden_dim), jnp.float32, -s_in, s_in),
        "w_hop": jax.random.uniform(ks[2], (radius, hidden_dim, hidden_dim), jnp.float32, -s_h, s_h),
        "b_hop": jax.random.uniform(ks[3], (radius, hidden_dim), jnp.float32, -s_h, s_h),
        "bn1_gamma": jnp.ones((1, hidden_dim), jnp.float32),
        "bn1_beta": jnp.zeros((1, hidden_dim), jnp.float32),
        "bn2_gamma": jnp.ones((1, hidden_dim), jnp.float32),
        "bn2_beta": jnp.zeros((1, hidden_dim), jnp.float32),
        "w_fc": jax.random.uniform(ks[4], (hidden_dim, hidden_dim), jnp.float32, -s_h, s_h),
        "b_fc": jax.random.uniform(ks[5], (1, hidden_dim), jnp.float32, -s_h, s_h),
    }


def _reference(adj, feat, idx, params, radius, num_graphs):
    """Pure-JAX reference mirroring the kernel's precision choices (bf16 adj@x)."""
    adj_b = adj.astype(jnp.bfloat16)
    x = jnp.maximum(feat @ params["w_in"] + params["b_in"], 0.0)
    for r in range(radius):
        ax = jnp.dot(adj_b, x.astype(jnp.bfloat16), preferred_element_type=jnp.float32)
        x = jnp.maximum(ax @ params["w_hop"][r] + params["b_hop"][r][None, :], 0.0)
    m1 = x.mean(0, keepdims=True)
    v1 = ((x - m1) ** 2).mean(0, keepdims=True)
    x = (x - m1) * jax.lax.rsqrt(v1 + _EPS) * params["bn1_gamma"] + params["bn1_beta"]
    onehot = (jnp.arange(num_graphs)[:, None] == idx[None, :]).astype(jnp.float32)
    pooled = onehot @ x
    m2 = pooled.mean(0, keepdims=True)
    v2 = ((pooled - m2) ** 2).mean(0, keepdims=True)
    pooled = (pooled - m2) * jax.lax.rsqrt(v2 + _EPS) * params["bn2_gamma"] + params["bn2_beta"]
    return jnp.maximum(pooled @ params["w_fc"] + params["b_fc"], 0.0)


if __name__ == "__main__":
    # Small deterministic example: 16 nodes, 8 input features, hidden 32,
    # radius 2, 4 graphs of 4 nodes each.
    input_dim, hidden_dim, radius = 8, 32, 2
    num_nodes, num_graphs = 16, 4

    key = jax.random.PRNGKey(0)
    k_adj, k_feat, k_param = jax.random.split(key, 3)

    adj = (jax.random.uniform(k_adj, (num_nodes, num_nodes)) > 0.7).astype(jnp.float32)
    adj = jnp.maximum(adj, adj.T)                         # symmetric adjacency
    final_features = jax.random.normal(k_feat, (num_nodes, input_dim), jnp.float32)
    idx = jnp.repeat(jnp.arange(num_graphs, dtype=jnp.int32),
                     num_nodes // num_graphs)
    segment = jnp.zeros((num_nodes,), jnp.int32)          # unused by forward

    params = init_params(k_param, input_dim, hidden_dim, radius)

    fwd = jax.jit(k_hop_graphnn_forward, static_argnames=("radius", "num_graphs"))
    out = fwd(adj, final_features, segment, idx, params,
              radius=radius, num_graphs=num_graphs)
    out = jax.block_until_ready(out)

    ref = _reference(adj, final_features, idx, params, radius, num_graphs)
    assert out.shape == (num_graphs, hidden_dim)
    assert bool(jnp.all(jnp.isfinite(out)))
    assert bool(jnp.allclose(out, ref, rtol=5e-2, atol=5e-2)), \
        float(jnp.max(jnp.abs(out - ref)))
    print("KERNEL_OK")
</pallas_src>

<mosaic_0001>
module attributes {stable_mosaic.version = 11 : i64} {
  func.func @_hop_kernel(%arg0: i32, %arg1: i32, %arg2: memref<128x128xbf16, #tpu.memory_space<vmem>>, %arg3: memref<128x128xbf16, #tpu.memory_space<vmem>>, %arg4: memref<128x128xf32, #tpu.memory_space<vmem>>, %arg5: memref<1x128xf32, #tpu.memory_space<vmem>>, %arg6: memref<128x128xf32, #tpu.memory_space<vmem>>, %arg7: memref<128x128xf32, #tpu.memory_space<vmem>>) attributes {dimension_semantics = [#tpu.dimension_semantics<parallel>, #tpu.dimension_semantics<arbitrary>], iteration_bounds = array<i64: 1, 1>, scalar_prefetch = 0 : i64, scratch_operands = 1 : i64, tpu.core_type = #tpu.core_type<tc>, window_params = [{transform_indices = @transform_0, window_bounds = array<i64: 128, 128>}, {transform_indices = @transform_1, window_bounds = array<i64: 128, 128>}, {pipeline_mode = #tpu.pipeline_mode<synchronous>, transform_indices = @transform_2, window_bounds = array<i64: 128, 128>}, {pipeline_mode = #tpu.pipeline_mode<synchronous>, transform_indices = @transform_3, window_bounds = array<i64: 1, 128>}, {transform_indices = @transform_4, window_bounds = array<i64: 128, 128>}]} {
    %c0_i32 = arith.constant 0 : i32
    %0 = arith.cmpi eq, %arg1, %c0_i32 : i32
    %1 = arith.extui %0 : i1 to i32
    %c0_i32_0 = arith.constant 0 : i32
    %2 = arith.cmpi ne, %1, %c0_i32_0 : i32
    scf.if %2 {
      %cst_10 = arith.constant 0.000000e+00 : f32
      %12 = vector.broadcast %cst_10 : f32 to vector<128x128xf32>
      %c0_11 = arith.constant 0 : index
      %c0_12 = arith.constant 0 : index
      %13 = vector.load %arg7[%c0_11, %c0_12] : memref<128x128xf32, #tpu.memory_space<vmem>>, vector<128x128xf32>
      tpu.vector_store %arg7[%c0_11, %c0_12], %12 {strides = array<i32>} : memref<128x128xf32, #tpu.memory_space<vmem>>, vector<128x128xf32>,
    } else {
    }
    %c0 = arith.constant 0 : index
    %c0_1 = arith.constant 0 : index
    %3 = vector.load %arg7[%c0, %c0_1] : memref<128x128xf32, #tpu.memory_space<vmem>>, vector<128x128xf32>
    %c0_2 = arith.constant 0 : index
    %c0_3 = arith.constant 0 : index
    %4 = vector.load %arg2[%c0_2, %c0_3] : memref<128x128xbf16, #tpu.memory_space<vmem>>, vector<128x128xbf16>
    %c0_4 = arith.constant 0 : index
    %c0_5 = arith.constant 0 : index
    %5 = vector.load %arg3[%c0_4, %c0_5] : memref<128x128xbf16, #tpu.memory_space<vmem>>, vector<128x128xbf16>
    %cst = arith.constant dense<0.000000e+00> : vector<128x128xf32>
    %6 = tpu.matmul %4, %5, %cst {dimension_numbers = #tpu.dot_dimension_numbers<[1], [0], [0], [1], [0, 0, 1, 1], [], []>} : vector<128x128xbf16>, vector<128x128xbf16>, vector<128x128xf32> -> vector<128x128xf32>
    %7 = arith.addf %3, %6 : vector<128x128xf32>
    %c0_6 = arith.constant 0 : index
    %c0_7 = arith.constant 0 : index
    %8 = vector.load %arg7[%c0_6, %c0_7] : memref<128x128xf32, #tpu.memory_space<vmem>>, vector<128x128xf32>
    tpu.vector_store %arg7[%c0_6, %c0_7], %7 {strides = array<i32>} : memref<128x128xf32, #tpu.memory_space<vmem>>, vector<128x128xf32>,
    %c0_i32_8 = arith.constant 0 : i32
    %9 = arith.cmpi eq, %arg1, %c0_i32_8 : i32
    %10 = arith.extui %9 : i1 to i32
    %c0_i32_9 = arith.constant 0 : i32
    %11 = arith.cmpi ne, %10, %c0_i32_9 : i32
    scf.if %11 {
      %c0_10 = arith.constant 0 : index
      %c0_11 = arith.constant 0 : index
      %12 = vector.load %arg7[%c0_10, %c0_11] : memref<128x128xf32, #tpu.memory_space<vmem>>, vector<128x128xf32>
      %c0_12 = arith.constant 0 : index
      %c0_13 = arith.constant 0 : index
      %13 = vector.load %arg4[%c0_12, %c0_13] : memref<128x128xf32, #tpu.memory_space<vmem>>, vector<128x128xf32>
      %cst_14 = arith.constant dense<0.000000e+00> : vector<128x128xf32>
      %14 = tpu.matmul %12, %13, %cst_14 {dimension_numbers = #tpu.dot_dimension_numbers<[1], [0], [0], [1], [0, 0, 1, 1], [], []>} : vector<128x128xf32>, vector<128x128xf32>, vector<128x128xf32> -> vector<128x128xf32>
      %c0_15 = arith.constant 0 : index
      %c0_16 = arith.constant 0 : index
      %15 = vector.load %arg5[%c0_15, %c0_16] : memref<1x128xf32, #tpu.memory_space<vmem>>, vector<1x128xf32>
      %16 = vector.broadcast %15 : vector<1x128xf32> to vector<128x128xf32>
      %17 = arith.addf %14, %16 : vector<128x128xf32>
      %cst_17 = arith.constant 0.000000e+00 : f32
      %18 = vector.broadcast %cst_17 : f32 to vector<128x128xf32>
      %19 = arith.maximumf %17, %18 : vector<128x128xf32>
      %c0_18 = arith.constant 0 : index
      %c0_19 = arith.constant 0 : index
      %20 = vector.load %arg6[%c0_18, %c0_19] : memref<128x128xf32, #tpu.memory_space<vmem>>, vector<128x128xf32>
      tpu.vector_store %arg6[%c0_18, %c0_19], %19 {strides = array<i32>} : memref<128x128xf32, #tpu.memory_space<vmem>>, vector<128x128xf32>,
    } else {
    }
    return
  }
  func.func @transform_0(%arg0: i32, %arg1: i32) -> (i32, i32) {
    %c0_i32 = arith.constant 0 : i32
    return %arg0, %arg1 : i32, i32
  }
  func.func @transform_1(%arg0: i32, %arg1: i32) -> (i32, i32) {
    %c0_i32 = arith.constant 0 : i32
    %c0_i32_0 = arith.constant 0 : i32
    return %arg1, %c0_i32 : i32, i32
  }
  func.func @transform_2(%arg0: i32, %arg1: i32) -> (i32, i32) {
    %c0_i32 = arith.constant 0 : i32
    %c0_i32_0 = arith.constant 0 : i32
    %c0_i32_1 = arith.constant 0 : i32
    return %c0_i32, %c0_i32_0 : i32, i32
  }
  func.func @transform_3(%arg0: i32, %arg1: i32) -> (i32, i32) {
    %c0_i32 = arith.constant 0 : i32
    %c0_i32_0 = arith.constant 0 : i32
    %c0_i32_1 = arith.constant 0 : i32
    return %c0_i32, %c0_i32_0 : i32, i32
  }
  func.func @transform_4(%arg0: i32, %arg1: i32) -> (i32, i32) {
    %c0_i32 = arith.constant 0 : i32
    %c0_i32_0 = arith.constant 0 : i32
    return %arg0, %c0_i32 : i32, i32
  }
}

module attributes {stable_mosaic.version = 11 : i64} {
  func.func @_hop_kernel(%arg0: i32, %arg1: i32, %arg2: memref<128x128xbf16, #tpu.memory_space<vmem>>, %arg3: memref<128x128xbf16, #tpu.memory_space<vmem>>, %arg4: memref<128x128xf32, #tpu.memory_space<vmem>>, %arg5: memref<1x128xf32, #tpu.memory_space<vmem>>, %arg6: memref<128x128xbf16, #tpu.memory_space<vmem>>, %arg7: memref<128x128xf32, #tpu.memory_space<vmem>>) attributes {dimension_semantics = [#tpu.dimension_semantics<parallel>, #tpu.dimension_semantics<arbitrary>], iteration_bounds = array<i64: 1, 1>, scalar_prefetch = 0 : i64, scratch_operands = 1 : i64, tpu.core_type = #tpu.core_type<tc>, window_params = [{transform_indices = @transform_0, window_bounds = array<i64: 128, 128>}, {transform_indices = @transform_1, window_bounds = array<i64: 128, 128>}, {pipeline_mode = #tpu.pipeline_mode<synchronous>, transform_indices = @transform_2, window_bounds = array<i64: 128, 128>}, {pipeline_mode = #tpu.pipeline_mode<synchronous>, transform_indices = @transform_3, window_bounds = array<i64: 1, 128>}, {transform_indices = @transform_4, window_bounds = array<i64: 128, 128>}]} {
    %c0_i32 = arith.constant 0 : i32
    %0 = arith.cmpi eq, %arg1, %c0_i32 : i32
    %1 = arith.extui %0 : i1 to i32
    %c0_i32_0 = arith.constant 0 : i32
    %2 = arith.cmpi ne, %1, %c0_i32_0 : i32
    scf.if %2 {
      %cst_10 = arith.constant 0.000000e+00 : f32
      %12 = vector.broadcast %cst_10 : f32 to vector<128x128xf32>
      %c0_11 = arith.constant 0 : index
      %c0_12 = arith.constant 0 : index
      %13 = vector.load %arg7[%c0_11, %c0_12] : memref<128x128xf32, #tpu.memory_space<vmem>>, vector<128x128xf32>
      tpu.vector_store %arg7[%c0_11, %c0_12], %12 {strides = array<i32>} : memref<128x128xf32, #tpu.memory_space<vmem>>, vector<128x128xf32>,
    } else {
    }
    %c0 = arith.constant 0 : index
    %c0_1 = arith.constant 0 : index
    %3 = vector.load %arg7[%c0, %c0_1] : memref<128x128xf32, #tpu.memory_space<vmem>>, vector<128x128xf32>
    %c0_2 = arith.constant 0 : index
    %c0_3 = arith.constant 0 : index
    %4 = vector.load %arg2[%c0_2, %c0_3] : memref<128x128xbf16, #tpu.memory_space<vmem>>, vector<128x128xbf16>
    %c0_4 = arith.constant 0 : index
    %c0_5 = arith.constant 0 : index
    %5 = vector.load %arg3[%c0_4, %c0_5] : memref<128x128xbf16, #tpu.memory_space<vmem>>, vector<128x128xbf16>
    %cst = arith.constant dense<0.000000e+00> : vector<128x128xf32>
    %6 = tpu.matmul %4, %5, %cst {dimension_numbers = #tpu.dot_dimension_numbers<[1], [0], [0], [1], [0, 0, 1, 1], [], []>} : vector<128x128xbf16>, vector<128x128xbf16>, vector<128x128xf32> -> vector<128x128xf32>
    %7 = arith.addf %3, %6 : vector<128x128xf32>
    %c0_6 = arith.constant 0 : index
    %c0_7 = arith.constant 0 : index
    %8 = vector.load %arg7[%c0_6, %c0_7] : memref<128x128xf32, #tpu.memory_space<vmem>>, vector<128x128xf32>
    tpu.vector_store %arg7[%c0_6, %c0_7], %7 {strides = array<i32>} : memref<128x128xf32, #tpu.memory_space<vmem>>, vector<128x128xf32>,
    %c0_i32_8 = arith.constant 0 : i32
    %9 = arith.cmpi eq, %arg1, %c0_i32_8 : i32
    %10 = arith.extui %9 : i1 to i32
    %c0_i32_9 = arith.constant 0 : i32
    %11 = arith.cmpi ne, %10, %c0_i32_9 : i32
    scf.if %11 {
      %c0_10 = arith.constant 0 : index
      %c0_11 = arith.constant 0 : index
      %12 = vector.load %arg7[%c0_10, %c0_11] : memref<128x128xf32, #tpu.memory_space<vmem>>, vector<128x128xf32>
      %c0_12 = arith.constant 0 : index
      %c0_13 = arith.constant 0 : index
      %13 = vector.load %arg4[%c0_12, %c0_13] : memref<128x128xf32, #tpu.memory_space<vmem>>, vector<128x128xf32>
      %cst_14 = arith.constant dense<0.000000e+00> : vector<128x128xf32>
      %14 = tpu.matmul %12, %13, %cst_14 {dimension_numbers = #tpu.dot_dimension_numbers<[1], [0], [0], [1], [0, 0, 1, 1], [], []>} : vector<128x128xf32>, vector<128x128xf32>, vector<128x128xf32> -> vector<128x128xf32>
      %c0_15 = arith.constant 0 : index
      %c0_16 = arith.constant 0 : index
      %15 = vector.load %arg5[%c0_15, %c0_16] : memref<1x128xf32, #tpu.memory_space<vmem>>, vector<1x128xf32>
      %16 = vector.broadcast %15 : vector<1x128xf32> to vector<128x128xf32>
      %17 = arith.addf %14, %16 : vector<128x128xf32>
      %cst_17 = arith.constant 0.000000e+00 : f32
      %18 = vector.broadcast %cst_17 : f32 to vector<128x128xf32>
      %19 = arith.maximumf %17, %18 : vector<128x128xf32>
      %20 = arith.truncf %19 : vector<128x128xf32> to vector<128x128xbf16>
      %c0_18 = arith.constant 0 : index
      %c0_19 = arith.constant 0 : index
      %21 = vector.load %arg6[%c0_18, %c0_19] : memref<128x128xbf16, #tpu.memory_space<vmem>>, vector<128x128xbf16>
      tpu.vector_store %arg6[%c0_18, %c0_19], %20 {strides = array<i32>} : memref<128x128xbf16, #tpu.memory_space<vmem>>, vector<128x128xbf16>,
    } else {
    }
    return
  }
  func.func @transform_0(%arg0: i32, %arg1: i32) -> (i32, i32) {
    %c0_i32 = arith.constant 0 : i32
    return %arg0, %arg1 : i32, i32
  }
  func.func @transform_1(%arg0: i32, %arg1: i32) -> (i32, i32) {
    %c0_i32 = arith.constant 0 : i32
    %c0_i32_0 = arith.constant 0 : i32
    return %arg1, %c0_i32 : i32, i32
  }
  func.func @transform_2(%arg0: i32, %arg1: i32) -> (i32, i32) {
    %c0_i32 = arith.constant 0 : i32
    %c0_i32_0 = arith.constant 0 : i32
    %c0_i32_1 = arith.constant 0 : i32
    return %c0_i32, %c0_i32_0 : i32, i32
  }
  func.func @transform_3(%arg0: i32, %arg1: i32) -> (i32, i32) {
    %c0_i32 = arith.constant 0 : i32
    %c0_i32_0 = arith.constant 0 : i32
    %c0_i32_1 = arith.constant 0 : i32
    return %c0_i32, %c0_i32_0 : i32, i32
  }
  func.func @transform_4(%arg0: i32, %arg1: i32) -> (i32, i32) {
    %c0_i32 = arith.constant 0 : i32
    %c0_i32_0 = arith.constant 0 : i32
    return %arg0, %c0_i32 : i32, i32
  }
}

module attributes {stable_mosaic.version = 11 : i64} {
  func.func @_proj_kernel(%arg0: i32, %arg1: memref<128x8xf32, #tpu.memory_space<vmem>>, %arg2: memref<8x128xf32, #tpu.memory_space<vmem>>, %arg3: memref<1x128xf32, #tpu.memory_space<vmem>>, %arg4: memref<128x128xbf16, #tpu.memory_space<vmem>>) attributes {dimension_semantics = [#tpu.dimension_semantics<parallel>], iteration_bounds = array<i64: 1>, scalar_prefetch = 0 : i64, scratch_operands = 0 : i64, tpu.core_type = #tpu.core_type<tc>, window_params = [{transform_indices = @transform_0, window_bounds = array<i64: 128, 8>}, {pipeline_mode = #tpu.pipeline_mode<synchronous>, transform_indices = @transform_1, window_bounds = array<i64: 8, 128>}, {pipeline_mode = #tpu.pipeline_mode<synchronous>, transform_indices = @transform_2, window_bounds = array<i64: 1, 128>}, {transform_indices = @transform_3, window_bounds = array<i64: 128, 128>}]} {
    %c0 = arith.constant 0 : index
    %c0_0 = arith.constant 0 : index
    %0 = vector.load %arg1[%c0, %c0_0] : memref<128x8xf32, #tpu.memory_space<vmem>>, vector<128x8xf32>
    %c0_1 = arith.constant 0 : index
    %c0_2 = arith.constant 0 : index
    %1 = vector.load %arg2[%c0_1, %c0_2] : memref<8x128xf32, #tpu.memory_space<vmem>>, vector<8x128xf32>
    %cst = arith.constant dense<0.000000e+00> : vector<128x128xf32>
    %2 = tpu.matmul %0, %1, %cst {dimension_numbers = #tpu.dot_dimension_numbers<[1], [0], [0], [1], [0, 0, 1, 1], [], []>} : vector<128x8xf32>, vector<8x128xf32>, vector<128x128xf32> -> vector<128x128xf32>
    %c0_3 = arith.constant 0 : index
    %c0_4 = arith.constant 0 : index
    %3 = vector.load %arg3[%c0_3, %c0_4] : memref<1x128xf32, #tpu.memory_space<vmem>>, vector<1x128xf32>
    %4 = vector.broadcast %3 : vector<1x128xf32> to vector<128x128xf32>
    %5 = arith.addf %2, %4 : vector<128x128xf32>
    %cst_5 = arith.constant 0.000000e+00 : f32
    %6 = vector.broadcast %cst_5 : f32 to vector<128x128xf32>
    %7 = arith.maximumf %5, %6 : vector<128x128xf32>
    %8 = arith.truncf %7 : vector<128x128xf32> to vector<128x128xbf16>
    %c0_6 = arith.constant 0 : index
    %c0_7 = arith.constant 0 : index
    %9 = vector.load %arg4[%c0_6, %c0_7] : memref<128x128xbf16, #tpu.memory_space<vmem>>, vector<128x128xbf16>
    tpu.vector_store %arg4[%c0_6, %c0_7], %8 {strides = array<i32>} : memref<128x128xbf16, #tpu.memory_space<vmem>>, vector<128x128xbf16>,
    return
  }
  func.func @transform_0(%arg0: i32) -> (i32, i32) {
    %c0_i32 = arith.constant 0 : i32
    %c0_i32_0 = arith.constant 0 : i32
    return %arg0, %c0_i32 : i32, i32
  }
  func.func @transform_1(%arg0: i32) -> (i32, i32) {
    %c0_i32 = arith.constant 0 : i32
    %c0_i32_0 = arith.constant 0 : i32
    %c0_i32_1 = arith.constant 0 : i32
    return %c0_i32, %c0_i32_0 : i32, i32
  }
  func.func @transform_2(%arg0: i32) -> (i32, i32) {
    %c0_i32 = arith.constant 0 : i32
    %c0_i32_0 = arith.constant 0 : i32
    %c0_i32_1 = arith.constant 0 : i32
    return %c0_i32, %c0_i32_0 : i32, i32
  }
  func.func @transform_3(%arg0: i32) -> (i32, i32) {
    %c0_i32 = arith.constant 0 : i32
    %c0_i32_0 = arith.constant 0 : i32
    return %arg0, %c0_i32 : i32, i32
  }
}

module attributes {stable_mosaic.version = 11 : i64} {
  func.func @_pool_kernel(%arg0: i32, %arg1: memref<128x128xf32, #tpu.memory_space<vmem>>, %arg2: memref<1x128xi32, #tpu.memory_space<vmem>>, %arg3: memref<1x128xf32, #tpu.memory_space<vmem>>, %arg4: memref<1x128xf32, #tpu.memory_space<vmem>>, %arg5: memref<1x128xf32, #tpu.memory_space<vmem>>, %arg6: memref<1x128xf32, #tpu.memory_space<vmem>>, %arg7: memref<128x128xf32, #tpu.memory_space<vmem>>, %arg8: memref<1x128xf32, #tpu.memory_space<vmem>>, %arg9: memref<4x128xf32, #tpu.memory_space<vmem>>, %arg10: memref<1x128xf32, #tpu.memory_space<vmem>>, %arg11: memref<1x128xf32, #tpu.memory_space<vmem>>, %arg12: memref<4x128xf32, #tpu.memory_space<vmem>>, %arg13: memref<4x1xf32, #tpu.memory_space<vmem>>) attributes {dimension_semantics = [#tpu.dimension_semantics<arbitrary>], iteration_bounds = array<i64: 1>, scalar_prefetch = 0 : i64, scratch_operands = 4 : i64, tpu.core_type = #tpu.core_type<tc>, window_params = [{transform_indices = @transform_0, window_bounds = array<i64: 128, 128>}, {transform_indices = @transform_1, window_bounds = array<i64: 1, 128>}, {pipeline_mode = #tpu.pipeline_mode<synchronous>, transform_indices = @transform_2, window_bounds = array<i64: 1, 128>}, {pipeline_mode = #tpu.pipeline_mode<synchronous>, transform_indices = @transform_3, window_bounds = array<i64: 1, 128>}, {pipeline_mode = #tpu.pipeline_mode<synchronous>, transform_indices = @transform_4, window_bounds = array<i64: 1, 128>}, {pipeline_mode = #tpu.pipeline_mode<synchronous>, transform_indices = @transform_5, window_bounds = array<i64: 1, 128>}, {pipeline_mode = #tpu.pipeline_mode<synchronous>, transform_indices = @transform_6, window_bounds = array<i64: 128, 128>}, {pipeline_mode = #tpu.pipeline_mode<synchronous>, transform_indices = @transform_7, window_bounds = array<i64: 1, 128>}, {pipeline_mode = #tpu.pipeline_mode<synchronous>, transform_indices = @transform_8, window_bounds = array<i64: 4, 128>}]} {
    %c0_i32 = arith.constant 0 : i32
    %0 = arith.cmpi eq, %arg0, %c0_i32 : i32
    %1 = arith.extui %0 : i1 to i32
    %c0_i32_0 = arith.constant 0 : i32
    %2 = arith.cmpi ne, %1, %c0_i32_0 : i32
    scf.if %2 {
      %cst_25 = arith.constant 0.000000e+00 : f32
      %43 = vector.broadcast %cst_25 : f32 to vector<1x128xf32>
      %c0_26 = arith.constant 0 : index
      %c0_27 = arith.constant 0 : index
      %44 = vector.load %arg10[%c0_26, %c0_27] : memref<1x128xf32, #tpu.memory_space<vmem>>, vector<1x128xf32>
      tpu.vector_store %arg10[%c0_26, %c0_27], %43 {strides = array<i32>} : memref<1x128xf32, #tpu.memory_space<vmem>>, vector<1x128xf32>,
      %cst_28 = arith.constant 0.000000e+00 : f32
      %45 = vector.broadcast %cst_28 : f32 to vector<1x128xf32>
      %c0_29 = arith.constant 0 : index
      %c0_30 = arith.constant 0 : index
      %46 = vector.load %arg11[%c0_29, %c0_30] : memref<1x128xf32, #tpu.memory_space<vmem>>, vector<1x128xf32>
      tpu.vector_store %arg11[%c0_29, %c0_30], %45 {strides = array<i32>} : memref<1x128xf32, #tpu.memory_space<vmem>>, vector<1x128xf32>,
      %cst_31 = arith.constant 0.000000e+00 : f32
      %47 = vector.broadcast %cst_31 : f32 to vector<4x128xf32>
      %c0_32 = arith.constant 0 : index
      %c0_33 = arith.constant 0 : index
      %48 = vector.load %arg12[%c0_32, %c0_33] : memref<4x128xf32, #tpu.memory_space<vmem>>, vector<4x128xf32>
      tpu.vector_store %arg12[%c0_32, %c0_33], %47 {strides = array<i32>} : memref<4x128xf32, #tpu.memory_space<vmem>>, vector<4x128xf32>,
      %cst_34 = arith.constant 0.000000e+00 : f32
      %49 = vector.broadcast %cst_34 : f32 to vector<4x1xf32>
      %c0_35 = arith.constant 0 : index
      %c0_36 = arith.constant 0 : index
      %50 = vector.load %arg13[%c0_35, %c0_36] : memref<4x1xf32, #tpu.memory_space<vmem>>, vector<4x1xf32>
      tpu.vector_store %arg13[%c0_35, %c0_36], %49 {strides = array<i32>} : memref<4x1xf32, #tpu.memory_space<vmem>>, vector<4x1xf32>,
    } else {
    }
    %c0 = arith.constant 0 : index
    %c0_1 = arith.constant 0 : index
    %3 = vector.load %arg1[%c0, %c0_1] : memref<128x128xf32, #tpu.memory_space<vmem>>, vector<128x128xf32>
    %4 = tpu.iota {dimensions = array<i32: 0>} : vector<128x1xi32>
    %c128_i32 = arith.constant 128 : i32
    %5 = arith.muli %arg0, %c128_i32 : i32
    %6 = vector.broadcast %5 : i32 to vector<128x1xi32>
    %7 = arith.addi %4, %6 : vector<128x1xi32>
    %c16_i32 = arith.constant 16 : i32
    %8 = vector.broadcast %c16_i32 : i32 to vector<128x1xi32>
    %9 = arith.cmpi slt, %7, %8 : vector<128x1xi32>
    %10 = arith.extui %9 : vector<128x1xi1> to vector<128x1xi32>
    %11 = arith.sitofp %10 : vector<128x1xi32> to vector<128x1xf32>
    %12 = vector.broadcast %11 : vector<128x1xf32> to vector<128x128xf32>
    %13 = arith.mulf %3, %12 : vector<128x128xf32>
    %c0_2 = arith.constant 0 : index
    %c0_3 = arith.constant 0 : index
    %14 = vector.load %arg10[%c0_2, %c0_3] : memref<1x128xf32, #tpu.memory_space<vmem>>, vector<1x128xf32>
    %cst = arith.constant dense<0.000000e+00> : vector<128xf32>
    %15 = vector.multi_reduction <add>, %13, %cst [0] : vector<128x128xf32> to vector<128xf32>
    %16 = vector.shape_cast %15 : vector<128xf32> to vector<1x128xf32>
    %17 = arith.addf %14, %16 : vector<1x128xf32>
    %c0_4 = arith.constant 0 : index
    %c0_5 = arith.constant 0 : index
    %18 = vector.load %arg10[%c0_4, %c0_5] : memref<1x128xf32, #tpu.memory_space<vmem>>, vector<1x128xf32>
    tpu.vector_store %arg10[%c0_4, %c0_5], %17 {strides = array<i32>} : memref<1x128xf32, #tpu.memory_space<vmem>>, vector<1x128xf32>,
    %c0_6 = arith.constant 0 : index
    %c0_7 = arith.constant 0 : index
    %19 = vector.load %arg11[%c0_6, %c0_7] : memref<1x128xf32, #tpu.memory_space<vmem>>, vector<1x128xf32>
    %20 = arith.mulf %13, %13 : vector<128x128xf32>
    %cst_8 = arith.constant dense<0.000000e+00> : vector<128xf32>
    %21 = vector.multi_reduction <add>, %20, %cst_8 [0] : vector<128x128xf32> to vector<128xf32>
    %22 = vector.shape_cast %21 : vector<128xf32> to vector<1x128xf32>
    %23 = arith.addf %19, %22 : vector<1x128xf32>
    %c0_9 = arith.constant 0 : index
    %c0_10 = arith.constant 0 : index
    %24 = vector.load %arg11[%c0_9, %c0_10] : memref<1x128xf32, #tpu.memory_space<vmem>>, vector<1x128xf32>
    tpu.vector_store %arg11[%c0_9, %c0_10], %23 {strides = array<i32>} : memref<1x128xf32, #tpu.memory_space<vmem>>, vector<1x128xf32>,
    %25 = tpu.iota {dimensions = array<i32: 0>} : vector<4x128xi32>
    %c0_11 = arith.constant 0 : index
    %c0_12 = arith.constant 0 : index
    %26 = vector.load %arg2[%c0_11, %c0_12] : memref<1x128xi32, #tpu.memory_space<vmem>>, vector<1x128xi32>
    %27 = vector.broadcast %26 : vector<1x128xi32> to vector<4x128xi32>
    %28 = arith.cmpi eq, %25, %27 : vector<4x128xi32>
    %29 = arith.extui %28 : vector<4x128xi1> to vector<4x128xi32>
    %30 = arith.sitofp %29 : vector<4x128xi32> to vector<4x128xf32>
    %c0_13 = arith.constant 0 : index
    %c0_14 = arith.constant 0 : index
    %31 = vector.load %arg12[%c0_13, %c0_14] : memref<4x128xf32, #tpu.memory_space<vmem>>, vector<4x128xf32>
    %cst_15 = arith.constant dense<0.000000e+00> : vector<4x128xf32>
    %32 = tpu.matmul %30, %13, %cst_15 {dimension_numbers = #tpu.dot_dimension_numbers<[1], [0], [0], [1], [0, 0, 1, 1], [], []>} : vector<4x128xf32>, vector<128x128xf32>, vector<4x128xf32> -> vector<4x128xf32>
    %33 = arith.addf %31, %32 : vector<4x128xf32>
    %c0_16 = arith.constant 0 : index
    %c0_17 = arith.constant 0 : index
    %34 = vector.load %arg12[%c0_16, %c0_17] : memref<4x128xf32, #tpu.memory_space<vmem>>, vector<4x128xf32>
    tpu.vector_store %arg12[%c0_16, %c0_17], %33 {strides = array<i32>} : memref<4x128xf32, #tpu.memory_space<vmem>>, vector<4x128xf32>,
    %c0_18 = arith.constant 0 : index
    %c0_19 = arith.constant 0 : index
    %35 = vector.load %arg13[%c0_18, %c0_19] : memref<4x1xf32, #tpu.memory_space<vmem>>, vector<4x1xf32>
    %cst_20 = arith.constant dense<0.000000e+00> : vector<4xf32>
    %36 = vector.multi_reduction <add>, %30, %cst_20 [1] : vector<4x128xf32> to vector<4xf32>
    %37 = vector.shape_cast %36 : vector<4xf32> to vector<4x1xf32>
    %38 = arith.addf %35, %37 : vector<4x1xf32>
    %c0_21 = arith.constant 0 : index
    %c0_22 = arith.constant 0 : index
    %39 = vector.load %arg13[%c0_21, %c0_22] : memref<4x1xf32, #tpu.memory_space<vmem>>, vector<4x1xf32>
    tpu.vector_store %arg13[%c0_21, %c0_22], %38 {strides = array<i32>} : memref<4x1xf32, #tpu.memory_space<vmem>>, vector<4x1xf32>,
    %c0_i32_23 = arith.constant 0 : i32
    %40 = arith.cmpi eq, %arg0, %c0_i32_23 : i32
    %41 = arith.extui %40 : i1 to i32
    %c0_i32_24 = arith.constant 0 : i32
    %42 = arith.cmpi ne, %41, %c0_i32_24 : i32
    scf.if %42 {
      %c0_25 = arith.constant 0 : index
      %c0_26 = arith.constant 0 : index
      %43 = vector.load %arg10[%c0_25, %c0_26] : memref<1x128xf32, #tpu.memory_space<vmem>>, vector<1x128xf32>
      %cst_27 = arith.constant 6.250000e-02 : f32
      %44 = vector.broadcast %cst_27 : f32 to vector<1x128xf32>
      %45 = arith.mulf %43, %44 : vector<1x128xf32>
      %c0_28 = arith.constant 0 : index
      %c0_29 = arith.constant 0 : index
      %46 = vector.load %arg11[%c0_28, %c0_29] : memref<1x128xf32, #tpu.memory_space<vmem>>, vector<1x128xf32>
      %cst_30 = arith.constant 6.250000e-02 : f32
      %47 = vector.broadcast %cst_30 : f32 to vector<1x128xf32>
      %48 = arith.mulf %46, %47 : vector<1x128xf32>
      %49 = arith.mulf %45, %45 : vector<1x128xf32>
      %50 = arith.subf %48, %49 : vector<1x128xf32>
      %cst_31 = arith.constant 0.000000e+00 : f32
      %51 = vector.broadcast %cst_31 : f32 to vector<1x128xf32>
      %52 = arith.maximumf %50, %51 : vector<1x128xf32>
      %cst_32 = arith.constant 9.99999974E-6 : f32
      %53 = vector.broadcast %cst_32 : f32 to vector<1x128xf32>
      %54 = arith.addf %52, %53 : vector<1x128xf32>
      %55 = math.rsqrt %54 : vector<1x128xf32>
      %c0_33 = arith.constant 0 : index
      %c0_34 = arith.constant 0 : index
      %56 = vector.load %arg3[%c0_33, %c0_34] : memref<1x128xf32, #tpu.memory_space<vmem>>, vector<1x128xf32>
      %57 = arith.mulf %55, %56 : vector<1x128xf32>
      %c0_35 = arith.constant 0 : index
      %c0_36 = arith.constant 0 : index
      %58 = vector.load %arg13[%c0_35, %c0_36] : memref<4x1xf32, #tpu.memory_space<vmem>>, vector<4x1xf32>
      %c0_37 = arith.constant 0 : index
      %c0_38 = arith.constant 0 : index
      %59 = vector.load %arg12[%c0_37, %c0_38] : memref<4x128xf32, #tpu.memory_space<vmem>>, vector<4x128xf32>
      %60 = vector.broadcast %58 : vector<4x1xf32> to vector<4x128xf32>
      %61 = vector.broadcast %45 : vector<1x128xf32> to vector<4x128xf32>
      %62 = arith.mulf %60, %61 : vector<4x128xf32>
      %63 = arith.subf %59, %62 : vector<4x128xf32>
      %64 = vector.broadcast %57 : vector<1x128xf32> to vector<4x128xf32>
      %65 = arith.mulf %63, %64 : vector<4x128xf32>
      %c0_39 = arith.constant 0 : index
      %c0_40 = arith.constant 0 : index
      %66 = vector.load %arg4[%c0_39, %c0_40] : memref<1x128xf32, #tpu.memory_space<vmem>>, vector<1x128xf32>
      %67 = vector.broadcast %58 : vector<4x1xf32> to vector<4x128xf32>
      %68 = vector.broadcast %66 : vector<1x128xf32> to vector<4x128xf32>
      %69 = arith.mulf %67, %68 : vector<4x128xf32>
      %70 = arith.addf %65, %69 : vector<4x128xf32>
      %cst_41 = arith.constant dense<0.000000e+00> : vector<128xf32>
      %71 = vector.multi_reduction <add>, %70, %cst_41 [0] : vector<4x128xf32> to vector<128xf32>
      %72 = vector.shape_cast %71 : vector<128xf32> to vector<1x128xf32>
      %cst_42 = arith.constant 4.000000e+00 : f32
      %73 = vector.broadcast %cst_42 : f32 to vector<1x128xf32>
      %74 = arith.divf %72, %73 : vector<1x128xf32>
      %75 = vector.broadcast %74 : vector<1x128xf32> to vector<4x128xf32>
      %76 = arith.subf %70, %75 : vector<4x128xf32>
      %77 = arith.mulf %76, %76 : vector<4x128xf32>
      %cst_43 = arith.constant dense<0.000000e+00> : vector<128xf32>
      %78 = vector.multi_reduction <add>, %77, %cst_43 [0] : vector<4x128xf32> to vector<128xf32>
      %79 = vector.shape_cast %78 : vector<128xf32> to vector<1x128xf32>
      %cst_44 = arith.constant 4.000000e+00 : f32
      %80 = vector.broadcast %cst_44 : f32 to vector<1x128xf32>
      %81 = arith.divf %79, %80 : vector<1x128xf32>
      %82 = vector.broadcast %74 : vector<1x128xf32> to vector<4x128xf32>
      %83 = arith.subf %70, %82 : vector<4x128xf32>
      %cst_45 = arith.constant 9.99999974E-6 : f32
      %84 = vector.broadcast %cst_45 : f32 to vector<1x128xf32>
      %85 = arith.addf %81, %84 : vector<1x128xf32>
      %86 = math.rsqrt %85 : vector<1x128xf32>
      %87 = vector.broadcast %86 : vector<1x128xf32> to vector<4x128xf32>
      %88 = arith.mulf %83, %87 : vector<4x128xf32>
      %c0_46 = arith.constant 0 : index
      %c0_47 = arith.constant 0 : index
      %89 = vector.load %arg5[%c0_46, %c0_47] : memref<1x128xf32, #tpu.memory_space<vmem>>, vector<1x128xf32>
      %90 = vector.broadcast %89 : vector<1x128xf32> to vector<4x128xf32>
      %91 = arith.mulf %88, %90 : vector<4x128xf32>
      %c0_48 = arith.constant 0 : index
      %c0_49 = arith.constant 0 : index
      %92 = vector.load %arg6[%c0_48, %c0_49] : memref<1x128xf32, #tpu.memory_space<vmem>>, vector<1x128xf32>
      %93 = vector.broadcast %92 : vector<1x128xf32> to vector<4x128xf32>
      %94 = arith.addf %91, %93 : vector<4x128xf32>
      %c0_50 = arith.constant 0 : index
      %c0_51 = arith.constant 0 : index
      %95 = vector.load %arg7[%c0_50, %c0_51] : memref<128x128xf32, #tpu.memory_space<vmem>>, vector<128x128xf32>
      %cst_52 = arith.constant dense<0.000000e+00> : vector<4x128xf32>
      %96 = tpu.matmul %94, %95, %cst_52 {dimension_numbers = #tpu.dot_dimension_numbers<[1], [0], [0], [1], [0, 0, 1, 1], [], []>} : vector<4x128xf32>, vector<128x128xf32>, vector<4x128xf32> -> vector<4x128xf32>
      %c0_53 = arith.constant 0 : index
      %c0_54 = arith.constant 0 : index
      %97 = vector.load %arg8[%c0_53, %c0_54] : memref<1x128xf32, #tpu.memory_space<vmem>>, vector<1x128xf32>
      %98 = vector.broadcast %97 : vector<1x128xf32> to vector<4x128xf32>
      %99 = arith.addf %96, %98 : vector<4x128xf32>
      %cst_55 = arith.constant 0.000000e+00 : f32
      %100 = vector.broadcast %cst_55 : f32 to vector<4x128xf32>
      %101 = arith.maximumf %99, %100 : vector<4x128xf32>
      %c0_56 = arith.constant 0 : index
      %c0_57 = arith.constant 0 : index
      %102 = vector.load %arg9[%c0_56, %c0_57] : memref<4x128xf32, #tpu.memory_space<vmem>>, vector<4x128xf32>
      tpu.vector_store %arg9[%c0_56, %c0_57], %101 {strides = array<i32>} : memref<4x128xf32, #tpu.memory_space<vmem>>, vector<4x128xf32>,
    } else {
    }
    return
  }
  func.func @transform_0(%arg0: i32) -> (i32, i32) {
    %c0_i32 = arith.constant 0 : i32
    %c0_i32_0 = arith.constant 0 : i32
    return %arg0, %c0_i32 : i32, i32
  }
  func.func @transform_1(%arg0: i32) -> (i32, i32) {
    %c0_i32 = arith.constant 0 : i32
    %c0_i32_0 = arith.constant 0 : i32
    return %c0_i32, %arg0 : i32, i32
  }
  func.func @transform_2(%arg0: i32) -> (i32, i32) {
    %c0_i32 = arith.constant 0 : i32
    %c0_i32_0 = arith.constant 0 : i32
    %c0_i32_1 = arith.constant 0 : i32
    return %c0_i32, %c0_i32_0 : i32, i32
  }
  func.func @transform_3(%arg0: i32) -> (i32, i32) {
    %c0_i32 = arith.constant 0 : i32
    %c0_i32_0 = arith.constant 0 : i32
    %c0_i32_1 = arith.constant 0 : i32
    return %c0_i32, %c0_i32_0 : i32, i32
  }
  func.func @transform_4(%arg0: i32) -> (i32, i32) {
    %c0_i32 = arith.constant 0 : i32
    %c0_i32_0 = arith.constant 0 : i32
    %c0_i32_1 = arith.constant 0 : i32
    return %c0_i32, %c0_i32_0 : i32, i32
  }
  func.func @transform_5(%arg0: i32) -> (i32, i32) {
    %c0_i32 = arith.constant 0 : i32
    %c0_i32_0 = arith.constant 0 : i32
    %c0_i32_1 = arith.constant 0 : i32
    return %c0_i32, %c0_i32_0 : i32, i32
  }
  func.func @transform_6(%arg0: i32) -> (i32, i32) {
    %c0_i32 = arith.constant 0 : i32
    %c0_i32_0 = arith.constant 0 : i32
    %c0_i32_1 = arith.constant 0 : i32
    return %c0_i32, %c0_i32_0 : i32, i32
  }
  func.func @transform_7(%arg0: i32) -> (i32, i32) {
    %c0_i32 = arith.constant 0 : i32
    %c0_i32_0 = arith.constant 0 : i32
    %c0_i32_1 = arith.constant 0 : i32
    return %c0_i32, %c0_i32_0 : i32, i32
  }
  func.func @transform_8(%arg0: i32) -> (i32, i32) {
    %c0_i32 = arith.constant 0 : i32
    %c0_i32_0 = arith.constant 0 : i32
    %c0_i32_1 = arith.constant 0 : i32
    return %c0_i32, %c0_i32_0 : i32, i32
  }
}

</mosaic_0001>

<bundles_post_ra>
// kernel: k_hop_graphnn_forward.6
= control target key start
LH: loop header
LB: loop body
LE: loop exit
PB: predicated region body
PF: predicated region fallthrough
CT: control target
= control target key end

     0   :  { %s697_s1 = inlined_call_operand.vmem [shape: bf16[128,128], index: 1, kind: input, shape index: {}]   ;;  %s698_s0 = inlined_call_operand.vmem [shape: bf16[128,128], index: 0, kind: input, shape index: {}]   ;;  %s699_s2 = inlined_call_operand.vmem [shape: f32[128,128], index: 2, kind: input, shape index: {}]   ;;  %s700_s3 = inlined_call_operand.vmem [shape: f32[1,128], index: 3, kind: input, shape index: {}]   ;;  %s701_s4 = inlined_call_operand.vmem [shape: f32[128,128], index: 4, kind: output, shape index: {}]  }
   0x1   :  { %v481_v0 = vld [vmem:[%s697_s1 + $0x38] sm:$0xff]  ;;  %v480_v1 = vld [vmem:[%s697_s1 + $0x30] sm:$0xff]  ;;  %v479_v2 = vld [vmem:[%s697_s1 + $0x28] sm:$0xff] }
   0x2   :  { %482 = vmatpush.bf16.msra.mxu2 %v481_v0  ;;  %181 = vmatpush.bf16.msra.mxu0 %v481_v0  ;;  %v478_v3 = vld [vmem:[%s697_s1 + $0x20] sm:$0xff]  ;;  %v477_v4 = vld [vmem:[%s697_s1 + $0x18] sm:$0xff]  ;;  %v476_v5 = vld [vmem:[%s697_s1 + $0x10] sm:$0xff] }
   0x3   :  { %v475_v6 = vld [vmem:[%s697_s1 + $0x8] sm:$0xff]  ;;  %v474_v7 = vld [vmem:[%s697_s1] sm:$0xff]  ;;  %v296_v12 = vld [vmem:[%s699_s2 + $0x78] sm:$0xff] }
   0x4   :  { %v470_v8 = vld [vmem:[%s698_s0 + $0x20] sm:$0xff]  ;;  %v471_v10 = vld [vmem:[%s698_s0 + $0x28] sm:$0xff]  ;;  %v295_v13 = vld [vmem:[%s699_s2 + $0x70] sm:$0xff]  ;;  %301 = vmatpush.msra.mxu1 %v296_v12  ;;  %490 = vmatpush.msra.mxu3 %v296_v12 }
   0x5   :  { %v466_v9 = vld [vmem:[%s698_s0] sm:$0xff]  ;;  %v467_v11 = vld [vmem:[%s698_s0 + $0x8] sm:$0xff]  ;;  %v292_v16 = vld [vmem:[%s699_s2 + $0x58] sm:$0xff] }
   0x6   :  { %483 = vmatpush.bf16.msra.mxu2 %v480_v1  ;;  %182 = vmatpush.bf16.msra.mxu0 %v480_v1  ;;  %v294_v14 = vld [vmem:[%s699_s2 + $0x68] sm:$0xff]  ;;  %v293_v15 = vld [vmem:[%s699_s2 + $0x60] sm:$0xff]  ;;  %v291_v17 = vld [vmem:[%s699_s2 + $0x50] sm:$0xff] }
   0x7   :  { %302 = vmatpush.msra.mxu1 %v295_v13  ;;  %491 = vmatpush.msra.mxu3 %v295_v13  ;;  %v290_v18 = vld [vmem:[%s699_s2 + $0x48] sm:$0xff]  ;;  %v472_v19 = vld [vmem:[%s698_s0 + $0x30] sm:$0xff]  ;;  %v289_v21 = vld [vmem:[%s699_s2 + $0x40] sm:$0xff] }
   0x8   :  { %v468_v20 = vld [vmem:[%s698_s0 + $0x10] sm:$0xff]  ;;  %v288_v22 = vld [vmem:[%s699_s2 + $0x38] sm:$0xff]  ;;  %v286_v24 = vld [vmem:[%s699_s2 + $0x28] sm:$0xff] }
   0x9   :  { %303 = vmatpush.msra.mxu1 %v294_v14  ;;  %492 = vmatpush.msra.mxu3 %v294_v14  ;;  %v287_v23 = vld [vmem:[%s699_s2 + $0x30] sm:$0xff]  ;;  %v285_v25 = vld [vmem:[%s699_s2 + $0x20] sm:$0xff]  ;;  %v284_v26 = vld [vmem:[%s699_s2 + $0x18] sm:$0xff] }
   0xa   :  { %484 = vmatpush.bf16.msra.mxu2 %v479_v2  ;;  %183 = vmatpush.bf16.msra.mxu0 %v479_v2  ;;  %v283_v27 = vld [vmem:[%s699_s2 + $0x10] sm:$0xff]  ;;  %v282_v28 = vld [vmem:[%s699_s2 + $0x8] sm:$0xff]  ;;  %v473_v29 = vld [vmem:[%s698_s0 + $0x38] sm:$0xff] }
   0xb   :  { %304 = vmatpush.msra.mxu1 %v293_v15  ;;  %493 = vmatpush.msra.mxu3 %v293_v15  ;;  %v469_v30 = vld [vmem:[%s698_s0 + $0x18] sm:$0xff]  ;;  %v281_v31 = vld [vmem:[%s699_s2] sm:$0xff] }
   0xc   :  { %v631_v48 = vld [vmem:[%s700_s3] ss:$0 sm:$0xff] }
   0xd   :  { %305 = vmatpush.msra.mxu1 %v292_v16  ;;  %494 = vmatpush.msra.mxu3 %v292_v16 }
   0xe   :  { %485 = vmatpush.bf16.msra.mxu2 %v478_v3  ;;  %184 = vmatpush.bf16.msra.mxu0 %v478_v3 }
   0xf   :  { %306 = vmatpush.msra.mxu1 %v291_v17  ;;  %495 = vmatpush.msra.mxu3 %v291_v17 }
  0x11   :  { %307 = vmatpush.msra.mxu1 %v290_v18  ;;  %496 = vmatpush.msra.mxu3 %v290_v18 }
  0x12   :  { %486 = vmatpush.bf16.msra.mxu2 %v477_v4  ;;  %185 = vmatpush.bf16.msra.mxu0 %v477_v4 }
  0x13   :  { %308 = vmatpush.msra.mxu1 %v289_v21  ;;  %497 = vmatpush.msra.mxu3 %v289_v21 }
  0x15   :  { %309 = vmatpush.msra.mxu1 %v288_v22  ;;  %498 = vmatpush.msra.mxu3 %v288_v22 }
  0x16   :  { %487 = vmatpush.bf16.msra.mxu2 %v476_v5  ;;  %186 = vmatpush.bf16.msra.mxu0 %v476_v5 }
  0x17   :  { %310 = vmatpush.msra.mxu1 %v287_v23  ;;  %499 = vmatpush.msra.mxu3 %v287_v23 }
  0x19   :  { %311 = vmatpush.msra.mxu1 %v286_v24  ;;  %500 = vmatpush.msra.mxu3 %v286_v24 }
  0x1a   :  { %488 = vmatpush.bf16.msra.mxu2 %v475_v6  ;;  %187 = vmatpush.bf16.msra.mxu0 %v475_v6 }
  0x1b   :  { %312 = vmatpush.msra.mxu1 %v285_v25  ;;  %501 = vmatpush.msra.mxu3 %v285_v25 }
  0x1d   :  { %313 = vmatpush.msra.mxu1 %v284_v26  ;;  %502 = vmatpush.msra.mxu3 %v284_v26 }
  0x1e   :  { %489 = vmatpush.bf16.msra.mxu2 %v474_v7  ;;  %188 = vmatpush.bf16.msra.mxu0 %v474_v7 }
  0x1f   :  { %314 = vmatpush.msra.mxu1 %v283_v27  ;;  %503 = vmatpush.msra.mxu3 %v283_v27 }
  0x21   :  { %209 = vmatmul.bf16.vlgmr.msra.gmra.mxu2 %v470_v8  ;;  %189 = vmatmul.bf16.vlgmr.msra.gmra.mxu0 %v466_v9 }
  0x22   :  { %315 = vmatpush.msra.mxu1 %v282_v28  ;;  %504 = vmatpush.msra.mxu3 %v282_v28 }
  0x24   :  { %316 = vmatpush.msra.mxu1 %v281_v31  ;;  %505 = vmatpush.msra.mxu3 %v281_v31 }
  0x31   :  { %214 = vmatmul.bf16.gmra.mxu2 %v471_v10  ;;  %194 = vmatmul.bf16.gmra.mxu0 %v467_v11 }
  0x41   :  { %219 = vmatmul.bf16.gmra.mxu2 %v472_v19  ;;  %199 = vmatmul.bf16.gmra.mxu0 %v468_v20 }
  0x51   :  { %224 = vmatmul.bf16.gmra.mxu2 %v473_v29  ;;  %204 = vmatmul.bf16.gmra.mxu0 %v469_v30 }
  0x9e   :  { %v190_v32 = vpop.f32.mrf.mxu0 }
  0x9f   :  { %317 = vmatmul.f32.vlgmr.msra.gmra.mxu1 %v190_v32 }
  0xa4   :  { %v210_v33 = vpop.f32.mrf.mxu2 }
  0xa5   :  { %341 = vmatmul.f32.vlgmr.msra.gmra.mxu3 %v210_v33 }
  0xa6   :  { %v192_v34 = vpop.f32.mrf.mxu0 }
  0xa7   :  { %320 = vmatmul.f32.gmra.mxu1 %v192_v34 }
  0xac   :  { %v212_v35 = vpop.f32.mrf.mxu2 }
  0xad   :  { %344 = vmatmul.f32.gmra.mxu3 %v212_v35 }
  0xae   :  { %v195_v36 = vpop.f32.mrf.mxu0 }
  0xaf   :  { %323 = vmatmul.f32.gmra.mxu1 %v195_v36 }
  0xb4   :  { %v215_v37 = vpop.f32.mrf.mxu2 }
  0xb5   :  { %347 = vmatmul.f32.gmra.mxu3 %v215_v37 }
  0xb6   :  { %v197_v38 = vpop.f32.mrf.mxu0 }
  0xb7   :  { %326 = vmatmul.f32.gmra.mxu1 %v197_v38 }
  0xbc   :  { %v217_v39 = vpop.f32.mrf.mxu2 }
  0xbd   :  { %350 = vmatmul.f32.gmra.mxu3 %v217_v39 }
  0xbe   :  { %v200_v40 = vpop.f32.mrf.mxu0 }
  0xbf   :  { %329 = vmatmul.f32.gmra.mxu1 %v200_v40 }
  0xc4   :  { %v220_v41 = vpop.f32.mrf.mxu2 }
  0xc5   :  { %353 = vmatmul.f32.gmra.mxu3 %v220_v41 }
  0xc6   :  { %v202_v42 = vpop.f32.mrf.mxu0 }
  0xc7   :  { %332 = vmatmul.f32.gmra.mxu1 %v202_v42 }
  0xcc   :  { %v222_v43 = vpop.f32.mrf.mxu2 }
  0xcd   :  { %356 = vmatmul.f32.gmra.mxu3 %v222_v43 }
  0xce   :  { %v205_v44 = vpop.f32.mrf.mxu0 }
  0xcf   :  { %335 = vmatmul.f32.gmra.mxu1 %v205_v44 }
  0xd4   :  { %v225_v45 = vpop.f32.mrf.mxu2 }
  0xd5   :  { %359 = vmatmul.f32.gmra.mxu3 %v225_v45 }
  0xd6   :  { %v207_v46 = vpop.f32.mrf.mxu0 }
  0xd7   :  { %338 = vmatmul.f32.gmra.mxu1 %v207_v46 }
  0xdc   :  { %v227_v47 = vpop.f32.mrf.mxu2 }
  0xdd   :  { %362 = vmatmul.f32.gmra.mxu3 %v227_v47 }
 0x11c   :  { %v318_v49 = vpop.f32.mrf.mxu1 }
 0x11d   :  { %v319_v50 = vadd.f32 %v631_v48, %v318_v49 }
 0x11f   :  { %v366_v51 = vmax.f32 %v319_v50, 0.0 }
 0x121   :  { %382 = vst [vmem:[%s701_s4] sm:$0xff] %v366_v51 }
 0x124   :  { %v321_v52 = vpop.f32.mrf.mxu1 }
 0x125   :  { %v322_v53 = vadd.f32 %v631_v48, %v321_v52 }
 0x127   :  { %v367_v54 = vmax.f32 %v322_v53, 0.0 }
 0x128   :  { %v342_v55 = vpop.f32.mrf.mxu3 }
 0x129   :  { %383 = vst [vmem:[%s701_s4 + $0x8] sm:$0xff] %v367_v54  ;;  %v343_v56 = vadd.f32 %v631_v48, %v342_v55 }
 0x12b   :  { %v374_v57 = vmax.f32 %v343_v56, 0.0 }
 0x12c   :  { %v324_v58 = vpop.f32.mrf.mxu1 }
 0x12d   :  { %390 = vst [vmem:[%s701_s4 + $0x40] sm:$0xff] %v374_v57  ;;  %v325_v59 = vadd.f32 %v631_v48, %v324_v58 }
 0x12f   :  { %v368_v60 = vmax.f32 %v325_v59, 0.0 }
 0x130   :  { %v345_v61 = vpop.f32.mrf.mxu3 }
 0x131   :  { %384 = vst [vmem:[%s701_s4 + $0x10] sm:$0xff] %v368_v60  ;;  %v346_v62 = vadd.f32 %v631_v48, %v345_v61 }
 0x133   :  { %v375_v63 = vmax.f32 %v346_v62, 0.0 }
 0x134   :  { %v327_v0 = vpop.f32.mrf.mxu1 }
 0x135   :  { %391 = vst [vmem:[%s701_s4 + $0x48] sm:$0xff] %v375_v63  ;;  %v328_v1 = vadd.f32 %v631_v48, %v327_v0 }
 0x137   :  { %v369_v2 = vmax.f32 %v328_v1, 0.0 }
 0x138   :  { %v348_v3 = vpop.f32.mrf.mxu3 }
 0x139   :  { %385 = vst [vmem:[%s701_s4 + $0x18] sm:$0xff] %v369_v2  ;;  %v349_v4 = vadd.f32 %v631_v48, %v348_v3 }
 0x13b   :  { %v376_v5 = vmax.f32 %v349_v4, 0.0 }
 0x13c   :  { %v330_v6 = vpop.f32.mrf.mxu1 }
 0x13d   :  { %392 = vst [vmem:[%s701_s4 + $0x50] sm:$0xff] %v376_v5  ;;  %v331_v7 = vadd.f32 %v631_v48, %v330_v6 }
 0x13f   :  { %v370_v8 = vmax.f32 %v331_v7, 0.0 }
 0x140   :  { %v351_v9 = vpop.f32.mrf.mxu3 }
 0x141   :  { %386 = vst [vmem:[%s701_s4 + $0x20] sm:$0xff] %v370_v8  ;;  %v352_v10 = vadd.f32 %v631_v48, %v351_v9 }
 0x143   :  { %v377_v11 = vmax.f32 %v352_v10, 0.0 }
 0x144   :  { %v333_v12 = vpop.f32.mrf.mxu1 }
 0x145   :  { %393 = vst [vmem:[%s701_s4 + $0x58] sm:$0xff] %v377_v11  ;;  %v334_v13 = vadd.f32 %v631_v48, %v333_v12 }
 0x147   :  { %v371_v14 = vmax.f32 %v334_v13, 0.0 }
 0x148   :  { %v354_v15 = vpop.f32.mrf.mxu3 }
 0x149   :  { %387 = vst [vmem:[%s701_s4 + $0x28] sm:$0xff] %v371_v14  ;;  %v355_v16 = vadd.f32 %v631_v48, %v354_v15 }
 0x14b   :  { %v378_v17 = vmax.f32 %v355_v16, 0.0 }
 0x14c   :  { %v336_v18 = vpop.f32.mrf.mxu1 }
 0x14d   :  { %394 = vst [vmem:[%s701_s4 + $0x60] sm:$0xff] %v378_v17  ;;  %v337_v19 = vadd.f32 %v631_v48, %v336_v18 }
 0x14f   :  { %v372_v20 = vmax.f32 %v337_v19, 0.0 }
 0x150   :  { %v357_v21 = vpop.f32.mrf.mxu3 }
 0x151   :  { %388 = vst [vmem:[%s701_s4 + $0x30] sm:$0xff] %v372_v20  ;;  %v358_v22 = vadd.f32 %v631_v48, %v357_v21 }
 0x153   :  { %v379_v23 = vmax.f32 %v358_v22, 0.0 }
 0x154   :  { %v339_v24 = vpop.f32.mrf.mxu1 }
 0x155   :  { %395 = vst [vmem:[%s701_s4 + $0x68] sm:$0xff] %v379_v23  ;;  %v340_v25 = vadd.f32 %v631_v48, %v339_v24 }
 0x157   :  { %v373_v26 = vmax.f32 %v340_v25, 0.0 }
 0x158   :  { %v360_v27 = vpop.f32.mrf.mxu3 }
 0x159   :  { %389 = vst [vmem:[%s701_s4 + $0x38] sm:$0xff] %v373_v26  ;;  %v361_v28 = vadd.f32 %v631_v48, %v360_v27 }
 0x15b   :  { %v380_v29 = vmax.f32 %v361_v28, 0.0 }
 0x15d   :  { %396 = vst [vmem:[%s701_s4 + $0x70] sm:$0xff] %v380_v29 }
 0x160   :  { %v363_v30 = vpop.f32.mrf.mxu3 }
 0x161   :  { %v364_v31 = vadd.f32 %v631_v48, %v363_v30 }
 0x163   :  { %v381_v32 = vmax.f32 %v364_v31, 0.0 }
 0x165   :  { %397 = vst [vmem:[%s701_s4 + $0x78] sm:$0xff] %v381_v32 }

// kernel: k_hop_graphnn_forward.4
= control target key start
LH: loop header
LB: loop body
LE: loop exit
PB: predicated region body
PF: predicated region fallthrough
CT: control target
= control target key end

     0   :  { %vm35_vm0 = vcmask 64512   ;;  %s382_s1 = inlined_call_operand.vmem [shape: f32[8,128], index: 1, kind: input, shape index: {}]   ;;  %s383_s0 = inlined_call_operand.vmem [shape: f32[128,8], index: 0, kind: input, shape index: {}]   ;;  %s384_s2 = inlined_call_operand.vmem [shape: f32[1,128], index: 2, kind: input, shape index: {}]   ;;  %s385_s3 = inlined_call_operand.vmem [shape: bf16[128,128], index: 3, kind: output, shape index: {}]  }
   0x1   :  { %v30_v0 = vld [vmem:[%s382_s1] sm:$0xff]  ;;  %v15_v5 = vld [vmem:[%s383_s0 + $0x8] sm:$0xff]  ;;  %v16_v9 = vld [vmem:[%s383_s0 + $0x10] sm:$0xff] }
   0x2   :  { %v14_v1 = vld [vmem:[%s383_s0] sm:$0xff]  ;;  %99 = vmatpush.msra.mxu0 %v30_v0  ;;  %264 = vmatpush.msra.mxu1 %v30_v0  ;;  %v19_v6 = vld [vmem:[%s383_s0 + $0x28] sm:$0xff]  ;;  %v20_v10 = vld [vmem:[%s383_s0 + $0x30] sm:$0xff] }
   0x3   :  { %v18_v2 = vld [vmem:[%s383_s0 + $0x20] sm:$0xff]  ;;  %265 = vmatpush.msra.mxu2 %v30_v0  ;;  %266 = vmatpush.msra.mxu3 %v30_v0  ;;  %v23_v7 = vld [vmem:[%s383_s0 + $0x48] sm:$0xff]  ;;  %v24_v11 = vld [vmem:[%s383_s0 + $0x50] sm:$0xff] }
   0x4   :  { %v22_v3 = vld [vmem:[%s383_s0 + $0x40] sm:$0xff]  ;;  %201 = vmatmul.msk.f32.vlgmr.msra.gmra.mxu0 %vm35_vm0, %v14_v1  ;;  %205 = vmatmul.msk.f32.vlgmr.msra.gmra.mxu1 %vm35_vm0, %v18_v2  ;;  %v27_v8 = vld [vmem:[%s383_s0 + $0x68] sm:$0xff]  ;;  %v28_v12 = vld [vmem:[%s383_s0 + $0x70] sm:$0xff] }
   0x5   :  { %v26_v4 = vld [vmem:[%s383_s0 + $0x60] sm:$0xff]  ;;  %209 = vmatmul.msk.f32.vlgmr.msra.gmra.mxu2 %vm35_vm0, %v22_v3  ;;  %v17_v13 = vld [vmem:[%s383_s0 + $0x18] sm:$0xff] }
   0x6   :  { %213 = vmatmul.msk.f32.vlgmr.msra.gmra.mxu3 %vm35_vm0, %v26_v4  ;;  %v21_v14 = vld [vmem:[%s383_s0 + $0x38] sm:$0xff]  ;;  %v267_v19 = vld [vmem:[%s384_s2] ss:$0 sm:$0xff] }
   0x7   :  { %v25_v15 = vld [vmem:[%s383_s0 + $0x58] sm:$0xff] }
   0x8   :  { %v29_v16 = vld [vmem:[%s383_s0 + $0x78] sm:$0xff] }
   0xc   :  { %202 = vmatmul.msk.f32.gmra.mxu0 %vm35_vm0, %v15_v5  ;;  %206 = vmatmul.msk.f32.gmra.mxu1 %vm35_vm0, %v19_v6 }
   0xd   :  { %210 = vmatmul.msk.f32.gmra.mxu2 %vm35_vm0, %v23_v7 }
   0xe   :  { %214 = vmatmul.msk.f32.gmra.mxu3 %vm35_vm0, %v27_v8 }
  0x14   :  { %203 = vmatmul.msk.f32.gmra.mxu0 %vm35_vm0, %v16_v9  ;;  %207 = vmatmul.msk.f32.gmra.mxu1 %vm35_vm0, %v20_v10 }
  0x15   :  { %211 = vmatmul.msk.f32.gmra.mxu2 %vm35_vm0, %v24_v11 }
  0x16   :  { %215 = vmatmul.msk.f32.gmra.mxu3 %vm35_vm0, %v28_v12 }
  0x1c   :  { %204 = vmatmul.msk.f32.gmra.mxu0 %vm35_vm0, %v17_v13  ;;  %208 = vmatmul.msk.f32.gmra.mxu1 %vm35_vm0, %v21_v14 }
  0x1d   :  { %212 = vmatmul.msk.f32.gmra.mxu2 %vm35_vm0, %v25_v15 }
  0x1e   :  { %216 = vmatmul.msk.f32.gmra.mxu3 %vm35_vm0, %v29_v16 }
  0x81   :  { %v101_v17 = vpop.f32.mrf.mxu0  ;;  %v113_v18 = vpop.f32.mrf.mxu1 }
  0x82   :  { %v102_v20 = vadd.f32 %v267_v19, %v101_v17  ;;  %v114_v21 = vadd.f32 %v267_v19, %v113_v18 }
  0x84   :  { %v149_v28 = vmax.f32 %v102_v20, 0.0  ;;  %v153_v29 = vmax.f32 %v114_v21, 0.0 }
  0x88   :  { %v125_v22 = vpop.f32.mrf.mxu2 }
  0x89   :  { %v137_v23 = vpop.f32.mrf.mxu3  ;;  %v104_v24 = vpop.f32.mrf.mxu0  ;;  %v126_v34 = vadd.f32 %v267_v19, %v125_v22 }
  0x8a   :  { %v116_v25 = vpop.f32.mrf.mxu1  ;;  %v105_v26 = vadd.f32 %v267_v19, %v104_v24  ;;  %v138_v35 = vadd.f32 %v267_v19, %v137_v23 }
  0x8b   :  { %v117_v27 = vadd.f32 %v267_v19, %v116_v25  ;;  %v157_v42 = vmax.f32 %v126_v34, 0.0 }
  0x8c   :  { %v150_v30 = vmax.f32 %v105_v26, 0.0  ;;  %v161_v43 = vmax.f32 %v138_v35, 0.0 }
  0x8d   :  { %v154_v31 = vmax.f32 %v117_v27, 0.0 }
  0x8e   :  { %v220_v32 = vpack.c.bf16 %v150_v30, %v149_v28 }
  0x8f   :  { %v230_v33 = vpack.c.bf16 %v154_v31, %v153_v29 }
  0x90   :  { %221 = vst [vmem:[%s385_s3] sm:$0xff] %v220_v32   ;;  %v128_v36 = vpop.f32.mrf.mxu2 }
  0x91   :  { %v140_v37 = vpop.f32.mrf.mxu3  ;;  %258 = vst [vmem:[%s385_s3 + $0x10] sm:$0xff] %v230_v33   ;;  %v129_v38 = vadd.f32 %v267_v19, %v128_v36  ;;  %v107_v40 = vpop.f32.mrf.mxu0 }
  0x92   :  { %v141_v39 = vadd.f32 %v267_v19, %v140_v37  ;;  %v119_v41 = vpop.f32.mrf.mxu1  ;;  %v108_v48 = vadd.f32 %v267_v19, %v107_v40 }
  0x93   :  { %v158_v44 = vmax.f32 %v129_v38, 0.0  ;;  %v120_v49 = vadd.f32 %v267_v19, %v119_v41 }
  0x94   :  { %v162_v45 = vmax.f32 %v141_v39, 0.0  ;;  %v151_v56 = vmax.f32 %v108_v48, 0.0 }
  0x95   :  { %v240_v46 = vpack.c.bf16 %v158_v44, %v157_v42  ;;  %v155_v57 = vmax.f32 %v120_v49, 0.0 }
  0x96   :  { %v250_v47 = vpack.c.bf16 %v162_v45, %v161_v43 }
  0x97   :  { %260 = vst [vmem:[%s385_s3 + $0x20] sm:$0xff] %v240_v46  }
  0x98   :  { %262 = vst [vmem:[%s385_s3 + $0x30] sm:$0xff] %v250_v47   ;;  %v131_v50 = vpop.f32.mrf.mxu2 }
  0x99   :  { %v143_v51 = vpop.f32.mrf.mxu3  ;;  %v110_v52 = vpop.f32.mrf.mxu0  ;;  %v132_v62 = vadd.f32 %v267_v19, %v131_v50 }
  0x9a   :  { %v122_v53 = vpop.f32.mrf.mxu1  ;;  %v111_v54 = vadd.f32 %v267_v19, %v110_v52  ;;  %v144_v63 = vadd.f32 %v267_v19, %v143_v51 }
  0x9b   :  { %v123_v55 = vadd.f32 %v267_v19, %v122_v53  ;;  %v159_v4 = vmax.f32 %v132_v62, 0.0 }
  0x9c   :  { %v152_v58 = vmax.f32 %v111_v54, 0.0  ;;  %v163_v5 = vmax.f32 %v144_v63, 0.0 }
  0x9d   :  { %v156_v59 = vmax.f32 %v123_v55, 0.0 }
  0x9e   :  { %v225_v60 = vpack.c.bf16 %v152_v58, %v151_v56 }
  0x9f   :  { %v235_v61 = vpack.c.bf16 %v156_v59, %v155_v57 }
  0xa0   :  { %257 = vst [vmem:[%s385_s3 + $0x8] sm:$0xff] %v225_v60   ;;  %v134_v0 = vpop.f32.mrf.mxu2 }
  0xa1   :  { %v146_v1 = vpop.f32.mrf.mxu3  ;;  %259 = vst [vmem:[%s385_s3 + $0x18] sm:$0xff] %v235_v61   ;;  %v135_v2 = vadd.f32 %v267_v19, %v134_v0 }
  0xa2   :  { %v147_v3 = vadd.f32 %v267_v19, %v146_v1 }
  0xa3   :  { %v160_v6 = vmax.f32 %v135_v2, 0.0 }
  0xa4   :  { %v164_v7 = vmax.f32 %v147_v3, 0.0 }
  0xa5   :  { %v245_v8 = vpack.c.bf16 %v160_v6, %v159_v4 }
  0xa6   :  { %v255_v9 = vpack.c.bf16 %v164_v7, %v163_v5 }
  0xa7   :  { %261 = vst [vmem:[%s385_s3 + $0x28] sm:$0xff] %v245_v8  }
  0xa8   :  { %263 = vst [vmem:[%s385_s3 + $0x38] sm:$0xff] %v255_v9  }

// kernel: k_hop_graphnn_forward.5
= control target key start
LH: loop header
LB: loop body
LE: loop exit
PB: predicated region body
PF: predicated region fallthrough
CT: control target
= control target key end

     0   :  { %s718_s1 = inlined_call_operand.vmem [shape: bf16[128,128], index: 1, kind: input, shape index: {}]   ;;  %s719_s0 = inlined_call_operand.vmem [shape: bf16[128,128], index: 0, kind: input, shape index: {}]   ;;  %s720_s2 = inlined_call_operand.vmem [shape: f32[128,128], index: 2, kind: input, shape index: {}]   ;;  %s721_s3 = inlined_call_operand.vmem [shape: f32[1,128], index: 3, kind: input, shape index: {}]   ;;  %s722_s4 = inlined_call_operand.vmem [shape: bf16[128,128], index: 4, kind: output, shape index: {}]  }
   0x1   :  { %v497_v0 = vld [vmem:[%s718_s1 + $0x38] sm:$0xff]  ;;  %v496_v1 = vld [vmem:[%s718_s1 + $0x30] sm:$0xff]  ;;  %v495_v2 = vld [vmem:[%s718_s1 + $0x28] sm:$0xff] }
   0x2   :  { %545 = vmatpush.bf16.msra.mxu2 %v497_v0  ;;  %181 = vmatpush.bf16.msra.mxu0 %v497_v0  ;;  %v494_v3 = vld [vmem:[%s718_s1 + $0x20] sm:$0xff]  ;;  %v493_v4 = vld [vmem:[%s718_s1 + $0x18] sm:$0xff]  ;;  %v492_v5 = vld [vmem:[%s718_s1 + $0x10] sm:$0xff] }
   0x3   :  { %v491_v6 = vld [vmem:[%s718_s1 + $0x8] sm:$0xff]  ;;  %v490_v7 = vld [vmem:[%s718_s1] sm:$0xff]  ;;  %v296_v12 = vld [vmem:[%s720_s2 + $0x78] sm:$0xff] }
   0x4   :  { %v486_v8 = vld [vmem:[%s719_s0 + $0x20] sm:$0xff]  ;;  %v487_v10 = vld [vmem:[%s719_s0 + $0x28] sm:$0xff]  ;;  %v295_v13 = vld [vmem:[%s720_s2 + $0x70] sm:$0xff]  ;;  %301 = vmatpush.msra.mxu1 %v296_v12  ;;  %553 = vmatpush.msra.mxu3 %v296_v12 }
   0x5   :  { %v482_v9 = vld [vmem:[%s719_s0] sm:$0xff]  ;;  %v483_v11 = vld [vmem:[%s719_s0 + $0x8] sm:$0xff]  ;;  %v292_v16 = vld [vmem:[%s720_s2 + $0x58] sm:$0xff] }
   0x6   :  { %546 = vmatpush.bf16.msra.mxu2 %v496_v1  ;;  %182 = vmatpush.bf16.msra.mxu0 %v496_v1  ;;  %v294_v14 = vld [vmem:[%s720_s2 + $0x68] sm:$0xff]  ;;  %v293_v15 = vld [vmem:[%s720_s2 + $0x60] sm:$0xff]  ;;  %v291_v17 = vld [vmem:[%s720_s2 + $0x50] sm:$0xff] }
   0x7   :  { %302 = vmatpush.msra.mxu1 %v295_v13  ;;  %554 = vmatpush.msra.mxu3 %v295_v13  ;;  %v290_v18 = vld [vmem:[%s720_s2 + $0x48] sm:$0xff]  ;;  %v488_v19 = vld [vmem:[%s719_s0 + $0x30] sm:$0xff]  ;;  %v289_v21 = vld [vmem:[%s720_s2 + $0x40] sm:$0xff] }
   0x8   :  { %v484_v20 = vld [vmem:[%s719_s0 + $0x10] sm:$0xff]  ;;  %v288_v22 = vld [vmem:[%s720_s2 + $0x38] sm:$0xff]  ;;  %v286_v24 = vld [vmem:[%s720_s2 + $0x28] sm:$0xff] }
   0x9   :  { %303 = vmatpush.msra.mxu1 %v294_v14  ;;  %555 = vmatpush.msra.mxu3 %v294_v14  ;;  %v287_v23 = vld [vmem:[%s720_s2 + $0x30] sm:$0xff]  ;;  %v285_v25 = vld [vmem:[%s720_s2 + $0x20] sm:$0xff]  ;;  %v284_v26 = vld [vmem:[%s720_s2 + $0x18] sm:$0xff] }
   0xa   :  { %547 = vmatpush.bf16.msra.mxu2 %v495_v2  ;;  %183 = vmatpush.bf16.msra.mxu0 %v495_v2  ;;  %v283_v27 = vld [vmem:[%s720_s2 + $0x10] sm:$0xff]  ;;  %v282_v28 = vld [vmem:[%s720_s2 + $0x8] sm:$0xff]  ;;  %v489_v29 = vld [vmem:[%s719_s0 + $0x38] sm:$0xff] }
   0xb   :  { %304 = vmatpush.msra.mxu1 %v293_v15  ;;  %556 = vmatpush.msra.mxu3 %v293_v15  ;;  %v485_v30 = vld [vmem:[%s719_s0 + $0x18] sm:$0xff]  ;;  %v281_v31 = vld [vmem:[%s720_s2] sm:$0xff] }
   0xc   :  { %v569_v49 = vld [vmem:[%s721_s3] ss:$0 sm:$0xff] }
   0xd   :  { %305 = vmatpush.msra.mxu1 %v292_v16  ;;  %557 = vmatpush.msra.mxu3 %v292_v16 }
   0xe   :  { %548 = vmatpush.bf16.msra.mxu2 %v494_v3  ;;  %184 = vmatpush.bf16.msra.mxu0 %v494_v3 }
   0xf   :  { %306 = vmatpush.msra.mxu1 %v291_v17  ;;  %558 = vmatpush.msra.mxu3 %v291_v17 }
  0x11   :  { %307 = vmatpush.msra.mxu1 %v290_v18  ;;  %559 = vmatpush.msra.mxu3 %v290_v18 }
  0x12   :  { %549 = vmatpush.bf16.msra.mxu2 %v493_v4  ;;  %185 = vmatpush.bf16.msra.mxu0 %v493_v4 }
  0x13   :  { %308 = vmatpush.msra.mxu1 %v289_v21  ;;  %560 = vmatpush.msra.mxu3 %v289_v21 }
  0x15   :  { %309 = vmatpush.msra.mxu1 %v288_v22  ;;  %561 = vmatpush.msra.mxu3 %v288_v22 }
  0x16   :  { %550 = vmatpush.bf16.msra.mxu2 %v492_v5  ;;  %186 = vmatpush.bf16.msra.mxu0 %v492_v5 }
  0x17   :  { %310 = vmatpush.msra.mxu1 %v287_v23  ;;  %562 = vmatpush.msra.mxu3 %v287_v23 }
  0x19   :  { %311 = vmatpush.msra.mxu1 %v286_v24  ;;  %563 = vmatpush.msra.mxu3 %v286_v24 }
  0x1a   :  { %551 = vmatpush.bf16.msra.mxu2 %v491_v6  ;;  %187 = vmatpush.bf16.msra.mxu0 %v491_v6 }
  0x1b   :  { %312 = vmatpush.msra.mxu1 %v285_v25  ;;  %564 = vmatpush.msra.mxu3 %v285_v25 }
  0x1d   :  { %313 = vmatpush.msra.mxu1 %v284_v26  ;;  %565 = vmatpush.msra.mxu3 %v284_v26 }
  0x1e   :  { %552 = vmatpush.bf16.msra.mxu2 %v490_v7  ;;  %188 = vmatpush.bf16.msra.mxu0 %v490_v7 }
  0x1f   :  { %314 = vmatpush.msra.mxu1 %v283_v27  ;;  %566 = vmatpush.msra.mxu3 %v283_v27 }
  0x21   :  { %209 = vmatmul.bf16.vlgmr.msra.gmra.mxu2 %v486_v8  ;;  %189 = vmatmul.bf16.vlgmr.msra.gmra.mxu0 %v482_v9 }
  0x22   :  { %315 = vmatpush.msra.mxu1 %v282_v28  ;;  %567 = vmatpush.msra.mxu3 %v282_v28 }
  0x24   :  { %316 = vmatpush.msra.mxu1 %v281_v31  ;;  %568 = vmatpush.msra.mxu3 %v281_v31 }
  0x31   :  { %214 = vmatmul.bf16.gmra.mxu2 %v487_v10  ;;  %194 = vmatmul.bf16.gmra.mxu0 %v483_v11 }
  0x41   :  { %219 = vmatmul.bf16.gmra.mxu2 %v488_v19  ;;  %199 = vmatmul.bf16.gmra.mxu0 %v484_v20 }
  0x51   :  { %224 = vmatmul.bf16.gmra.mxu2 %v489_v29  ;;  %204 = vmatmul.bf16.gmra.mxu0 %v485_v30 }
  0x9e   :  { %v190_v32 = vpop.f32.mrf.mxu0 }
  0x9f   :  { %317 = vmatmul.f32.vlgmr.msra.gmra.mxu1 %v190_v32 }
  0xa4   :  { %v210_v33 = vpop.f32.mrf.mxu2 }
  0xa5   :  { %341 = vmatmul.f32.vlgmr.msra.gmra.mxu3 %v210_v33 }
  0xa6   :  { %v192_v34 = vpop.f32.mrf.mxu0 }
  0xa7   :  { %320 = vmatmul.f32.gmra.mxu1 %v192_v34 }
  0xac   :  { %v212_v35 = vpop.f32.mrf.mxu2 }
  0xad   :  { %344 = vmatmul.f32.gmra.mxu3 %v212_v35 }
  0xae   :  { %v195_v36 = vpop.f32.mrf.mxu0 }
  0xaf   :  { %323 = vmatmul.f32.gmra.mxu1 %v195_v36 }
  0xb4   :  { %v215_v37 = vpop.f32.mrf.mxu2 }
  0xb5   :  { %347 = vmatmul.f32.gmra.mxu3 %v215_v37 }
  0xb6   :  { %v197_v38 = vpop.f32.mrf.mxu0 }
  0xb7   :  { %326 = vmatmul.f32.gmra.mxu1 %v197_v38 }
  0xbc   :  { %v217_v39 = vpop.f32.mrf.mxu2 }
  0xbd   :  { %350 = vmatmul.f32.gmra.mxu3 %v217_v39 }
  0xbe   :  { %v200_v40 = vpop.f32.mrf.mxu0 }
  0xbf   :  { %329 = vmatmul.f32.gmra.mxu1 %v200_v40 }
  0xc4   :  { %v220_v41 = vpop.f32.mrf.mxu2 }
  0xc5   :  { %353 = vmatmul.f32.gmra.mxu3 %v220_v41 }
  0xc6   :  { %v202_v42 = vpop.f32.mrf.mxu0 }
  0xc7   :  { %332 = vmatmul.f32.gmra.mxu1 %v202_v42 }
  0xcc   :  { %v222_v43 = vpop.f32.mrf.mxu2 }
  0xcd   :  { %356 = vmatmul.f32.gmra.mxu3 %v222_v43 }
  0xce   :  { %v205_v44 = vpop.f32.mrf.mxu0 }
  0xcf   :  { %335 = vmatmul.f32.gmra.mxu1 %v205_v44 }
  0xd4   :  { %v225_v45 = vpop.f32.mrf.mxu2 }
  0xd5   :  { %359 = vmatmul.f32.gmra.mxu3 %v225_v45 }
  0xd6   :  { %v207_v46 = vpop.f32.mrf.mxu0 }
  0xd7   :  { %338 = vmatmul.f32.gmra.mxu1 %v207_v46 }
  0xdc   :  { %v227_v47 = vpop.f32.mrf.mxu2 }
  0xdd   :  { %362 = vmatmul.f32.gmra.mxu3 %v227_v47 }
 0x11c   :  { %v318_v48 = vpop.f32.mrf.mxu1 }
 0x11d   :  { %v319_v50 = vadd.f32 %v569_v49, %v318_v48 }
 0x11f   :  { %v366_v52 = vmax.f32 %v319_v50, 0.0 }
 0x124   :  { %v321_v51 = vpop.f32.mrf.mxu1 }
 0x125   :  { %v322_v53 = vadd.f32 %v569_v49, %v321_v51 }
 0x127   :  { %v367_v54 = vmax.f32 %v322_v53, 0.0 }
 0x128   :  { %v342_v55 = vpop.f32.mrf.mxu3 }
 0x129   :  { %v501_v56 = vpack.c.bf16 %v367_v54, %v366_v52  ;;  %v343_v58 = vadd.f32 %v569_v49, %v342_v55 }
 0x12b   :  { %502 = vst [vmem:[%s722_s4] sm:$0xff] %v501_v56   ;;  %v374_v62 = vmax.f32 %v343_v58, 0.0 }
 0x12c   :  { %v324_v57 = vpop.f32.mrf.mxu1 }
 0x12d   :  { %v325_v60 = vadd.f32 %v569_v49, %v324_v57 }
 0x12f   :  { %v368_v1 = vmax.f32 %v325_v60, 0.0 }
 0x130   :  { %v345_v59 = vpop.f32.mrf.mxu3 }
 0x131   :  { %v346_v61 = vadd.f32 %v569_v49, %v345_v59 }
 0x133   :  { %v375_v63 = vmax.f32 %v346_v61, 0.0 }
 0x134   :  { %v327_v0 = vpop.f32.mrf.mxu1 }
 0x135   :  { %v521_v2 = vpack.c.bf16 %v375_v63, %v374_v62  ;;  %v328_v3 = vadd.f32 %v569_v49, %v327_v0 }
 0x137   :  { %541 = vst [vmem:[%s722_s4 + $0x20] sm:$0xff] %v521_v2   ;;  %v369_v4 = vmax.f32 %v328_v3, 0.0 }
 0x138   :  { %v348_v5 = vpop.f32.mrf.mxu3 }
 0x139   :  { %v506_v6 = vpack.c.bf16 %v369_v4, %v368_v1  ;;  %v349_v8 = vadd.f32 %v569_v49, %v348_v5 }
 0x13b   :  { %538 = vst [vmem:[%s722_s4 + $0x8] sm:$0xff] %v506_v6   ;;  %v376_v12 = vmax.f32 %v349_v8, 0.0 }
 0x13c   :  { %v330_v7 = vpop.f32.mrf.mxu1 }
 0x13d   :  { %v331_v10 = vadd.f32 %v569_v49, %v330_v7 }
 0x13f   :  { %v370_v15 = vmax.f32 %v331_v10, 0.0 }
 0x140   :  { %v351_v9 = vpop.f32.mrf.mxu3 }
 0x141   :  { %v352_v11 = vadd.f32 %v569_v49, %v351_v9 }
 0x143   :  { %v377_v13 = vmax.f32 %v352_v11, 0.0 }
 0x144   :  { %v333_v14 = vpop.f32.mrf.mxu1 }
 0x145   :  { %v526_v16 = vpack.c.bf16 %v377_v13, %v376_v12  ;;  %v334_v17 = vadd.f32 %v569_v49, %v333_v14 }
 0x147   :  { %542 = vst [vmem:[%s722_s4 + $0x28] sm:$0xff] %v526_v16   ;;  %v371_v18 = vmax.f32 %v334_v17, 0.0 }
 0x148   :  { %v354_v19 = vpop.f32.mrf.mxu3 }
 0x149   :  { %v511_v20 = vpack.c.bf16 %v371_v18, %v370_v15  ;;  %v355_v22 = vadd.f32 %v569_v49, %v354_v19 }
 0x14b   :  { %539 = vst [vmem:[%s722_s4 + $0x10] sm:$0xff] %v511_v20   ;;  %v378_v26 = vmax.f32 %v355_v22, 0.0 }
 0x14c   :  { %v336_v21 = vpop.f32.mrf.mxu1 }
 0x14d   :  { %v337_v24 = vadd.f32 %v569_v49, %v336_v21 }
 0x14f   :  { %v372_v29 = vmax.f32 %v337_v24, 0.0 }
 0x150   :  { %v357_v23 = vpop.f32.mrf.mxu3 }
 0x151   :  { %v358_v25 = vadd.f32 %v569_v49, %v357_v23 }
 0x153   :  { %v379_v27 = vmax.f32 %v358_v25, 0.0 }
 0x154   :  { %v339_v28 = vpop.f32.mrf.mxu1 }
 0x155   :  { %v531_v30 = vpack.c.bf16 %v379_v27, %v378_v26  ;;  %v340_v31 = vadd.f32 %v569_v49, %v339_v28 }
 0x157   :  { %543 = vst [vmem:[%s722_s4 + $0x30] sm:$0xff] %v531_v30   ;;  %v373_v32 = vmax.f32 %v340_v31, 0.0 }
 0x158   :  { %v360_v33 = vpop.f32.mrf.mxu3 }
 0x159   :  { %v516_v34 = vpack.c.bf16 %v373_v32, %v372_v29  ;;  %v361_v35 = vadd.f32 %v569_v49, %v360_v33 }
 0x15b   :  { %540 = vst [vmem:[%s722_s4 + $0x18] sm:$0xff] %v516_v34   ;;  %v380_v38 = vmax.f32 %v361_v35, 0.0 }
 0x160   :  { %v363_v36 = vpop.f32.mrf.mxu3 }
 0x161   :  { %v364_v37 = vadd.f32 %v569_v49, %v363_v36 }
 0x163   :  { %v381_v39 = vmax.f32 %v364_v37, 0.0 }
 0x165   :  { %v536_v40 = vpack.c.bf16 %v381_v39, %v380_v38 }
 0x167   :  { %544 = vst [vmem:[%s722_s4 + $0x38] sm:$0xff] %v536_v40  }

// kernel: k_hop_graphnn_forward.7
= control target key start
LH: loop header
LB: loop body
LE: loop exit
PB: predicated region body
PF: predicated region fallthrough
CT: control target
= control target key end

     0   :  { %v55_v0 = vlaneseq  ;;  %v449_v2 = vmov 0.0   ;;  %vm247_vm0 = vcmask 1043456   ;;  %s668_s0 = inlined_call_operand.vmem [shape: f32[128,128], index: 0, kind: input, shape index: {}]   ;;  %s669_s1 = inlined_call_operand.vmem [shape: s32[1,128], index: 1, kind: input, shape index: {}]   ;;  %s670_s2 = inlined_call_operand.vmem [shape: f32[1,128], index: 2, kind: input, shape index: {}]   ;;  %s671_s3 = inlined_call_operand.vmem [shape: f32[1,128], index: 3, kind: input, shape index: {}]   ;;  %s672_s4 = inlined_call_operand.vmem [shape: f32[1,128], index: 4, kind: input, shape index: {}]   ;;  %s673_s5 = inlined_call_operand.vmem [shape: f32[1,128], index: 5, kind: input, shape index: {}]   ;;  %s674_s6 = inlined_call_operand.vmem [shape: f32[128,128], index: 6, kind: input, shape index: {}]   ;;  %s675_s7 = inlined_call_operand.vmem [shape: f32[1,128], index: 7, kind: input, shape index: {}]   ;;  %s676_s8 = inlined_call_operand.hbm [shape: f32[4,128], index: 8, kind: output, shape index: {}]  }
   0x1   :  { %v502_v1 = vld [vmem:[%s669_s1] ss:$0 sm:$0xff]  ;;  %34 = vst [vmem:[#allocation2] sm:$0x1] %v449_v2  ;;  %v54_v3 = vld [vmem:[%s668_s0 + $0x78] sm:$0xff]  ;;  %v53_v4 = vld [vmem:[%s668_s0 + $0x70] sm:$0xff] }
   0x2   :  { %v52_v5 = vld [vmem:[%s668_s0 + $0x68] sm:$0xff]  ;;  %v514_v6 = vshrl.u32 %v55_v0, 7  ;;  %35 = vst [vmem:[#allocation3] sm:$0x1] %v449_v2  ;;  %v517_v7 = vmul.f32 0.0, %v54_v3  ;;  %v519_v8 = vmul.f32 0.0, %v53_v4 }
   0x3   :  { %36 = vst [vmem:[#allocation4] sm:$0xf] %v449_v2  ;;  %v51_v9 = vld [vmem:[%s668_s0 + $0x60] sm:$0xff]  ;;  %v528_v10 = vmul.f32 0.0, %v52_v5  ;;  %v50_v12 = vld [vmem:[%s668_s0 + $0x58] sm:$0xff]  ;;  %v49_v15 = vld [vmem:[%s668_s0 + $0x50] sm:$0xff] }
   0x4   :  { %vm220_vm1 = vcmp.eq.s32.totalorder %v514_v6, %v502_v1  ;;  %224 = vmatpush.msra.mxu0 %v517_v7  ;;  %v539_v14 = vmul.f32 0.0, %v51_v9  ;;  %v48_v16 = vld [vmem:[%s668_s0 + $0x48] sm:$0xff]  ;;  %v41_v17 = vld [vmem:[%s668_s0 + $0x10] sm:$0xff]  ;;  %v551_v18 = vmul.f32 0.0, %v50_v12  ;;  %v42_v19 = vld [vmem:[%s668_s0 + $0x18] sm:$0xff]  ;;  %v148_v22 = vmul.f32 0.0, %v49_v15 }
   0x5   :  { %v404_v11 = vsel %vm220_vm1, 1.0, %v449_v2  ;;  %v40_v20 = vld [vmem:[%s668_s0 + $0x8] sm:$0xff]  ;;  %v39_v21 = vld [vmem:[%s668_s0] sm:$0xff]  ;;  %v140_v23 = vmul.f32 0.0, %v41_v17 }
   0x6   :  { %v248_v13 = vsel %vm247_vm0, %v404_v11, 0.0  ;;  %225 = vmatpush.msra.mxu0 %v519_v8  ;;  %v155_v24 = vadd.f32 %v40_v20, %v39_v21 }
   0x7   :  { %249 = vadd.xlane.f32.xlu0 %v248_v13 }
   0x8   :  { %226 = vmatpush.msra.mxu0 %v528_v10 }
   0xa   :  { %227 = vmatpush.msra.mxu0 %v539_v14 }
   0xb   :  { %13 = vsyncpa [#allocation7], 0  ;;  %v47_v25 = vld [vmem:[%s668_s0 + $0x40] sm:$0xff]  ;;  %v147_v27 = vmul.f32 0.0, %v48_v16  ;;  %v141_v28 = vmul.f32 0.0, %v42_v19  ;;  %v156_v29 = vadd.f32 %v155_v24, %v140_v23  ;;  %v46_v30 = vld [vmem:[%s668_s0 + $0x38] sm:$0xff]  ;;  %v180_v38 = vmul.f32 %v40_v20, %v40_v20 }
   0xc   :  { %v43_v26 = vld [vmem:[%s668_s0 + $0x20] sm:$0xff]  ;;  %228 = vmatpush.msra.mxu0 %v551_v18  ;;  %v44_v31 = vld [vmem:[%s668_s0 + $0x28] sm:$0xff]  ;;  %v146_v32 = vmul.f32 0.0, %v47_v25  ;;  %v45_v35 = vld [vmem:[%s668_s0 + $0x30] sm:$0xff]  ;;  %v145_v36 = vmul.f32 0.0, %v46_v30  ;;  %v181_v41 = vmul.f32 %v140_v23, %v140_v23  ;;  %v179_v43 = vmul.f32 %v39_v21, %v39_v21  ;;  %s453_s27 = smov [#allocation6]  }
   0xd   :  { %v142_v33 = vmul.f32 0.0, %v43_v26  ;;  %v157_v34 = vadd.f32 %v156_v29, %v141_v28  ;;  %v143_v37 = vmul.f32 0.0, %v44_v31  ;;  %v144_v40 = vmul.f32 0.0, %v45_v35  ;;  %s393_s28 = sshll.u32 %s453_s27, 4  ;;  %s394_s28 = int_to_ptr.vmem [resolvable:$true] %s393_s28 }
   0xe   :  { %229 = vmatpush.msra.mxu0 %v148_v22  ;;  %v182_v44 = vmul.f32 %v141_v28, %v141_v28  ;;  %v195_v46 = vadd.f32 %v180_v38, %v179_v43  ;;  %v186_v56 = vmul.f32 %v145_v36, %v145_v36  ;;  %v187_v59 = vmul.f32 %v146_v32, %v146_v32 }
   0xf   :  { %v158_v39 = vadd.f32 %v157_v34, %v142_v33  ;;  %v183_v47 = vmul.f32 %v142_v33, %v142_v33  ;;  %v184_v50 = vmul.f32 %v143_v37, %v143_v37  ;;  %v185_v53 = vmul.f32 %v144_v40, %v144_v40  ;;  %v223_v34 = vld [vmem:[#allocation4] sm:$0xf] }
  0x10   :  { %230 = vmatpush.msra.mxu0 %v147_v27  ;;  %v196_v49 = vadd.f32 %v195_v46, %v181_v41  ;;  %v188_v62 = vmul.f32 %v147_v27, %v147_v27  ;;  %vm37_vm2 = vcmask 3072   ;;  %v189_v3 = vmul.f32 %v148_v22, %v148_v22  ;;  %v154_v41 = vld [vmem:[#allocation2] sm:$0x1] }
  0x11   :  { %v159_v42 = vadd.f32 %v158_v39, %v143_v37  ;;  %38 = vst.msk [vmem:[#allocation5] sm:$0xf] %vm37_vm2, %v449_v2  ;;  %v450_v9 = vmov 1.0   ;;  %v190_v11 = vmul.f32 %v551_v18, %v551_v18  ;;  %v191_v15 = vmul.f32 %v539_v14, %v539_v14 }
  0x12   :  { %231 = vmatpush.msra.mxu0 %v146_v32  ;;  %v197_v52 = vadd.f32 %v196_v49, %v182_v44  ;;  %v192_v17 = vmul.f32 %v528_v10, %v528_v10  ;;  %v193_v1 = vmul.f32 %v519_v8, %v519_v8 }
  0x13   :  { %v160_v45 = vadd.f32 %v159_v42, %v144_v40 }
  0x14   :  { %232 = vmatpush.msra.mxu0 %v145_v36  ;;  %v198_v55 = vadd.f32 %v197_v52, %v183_v47 }
  0x15   :  { %v161_v48 = vadd.f32 %v160_v45, %v145_v36 }
  0x16   :  { %233 = vmatpush.msra.mxu0 %v144_v40  ;;  %v199_v58 = vadd.f32 %v198_v55, %v184_v50 }
  0x17   :  { %v162_v51 = vadd.f32 %v161_v48, %v146_v32 }
  0x18   :  { %234 = vmatpush.msra.mxu0 %v143_v37  ;;  %v200_v61 = vadd.f32 %v199_v58, %v185_v53  ;;  %v246_v30 = vld [vmem:[#allocation5] sm:$0xf]  ;;  %v452_v58 = vmov 4.0  }
  0x19   :  { %v163_v54 = vadd.f32 %v162_v51, %v147_v27  ;;  %v178_v27 = vld [vmem:[#allocation3] sm:$0x1] }
  0x1a   :  { %235 = vmatpush.msra.mxu0 %v142_v33  ;;  %v201_v0 = vadd.f32 %v200_v61, %v186_v56 }
  0x1b   :  { %v164_v57 = vadd.f32 %v163_v54, %v148_v22 }
  0x1c   :  { %236 = vmatpush.msra.mxu0 %v141_v28  ;;  %v202_v5 = vadd.f32 %v201_v0, %v187_v59 }
  0x1d   :  { %v165_v60 = vadd.f32 %v164_v57, %v551_v18  ;;  %v194_v18 = vmul.f32 %v517_v7, %v517_v7  ;;  %v275_v57 = vld [vmem:[%s670_s2] sm:$0x1] }
  0x1e   :  { %237 = vmatpush.msra.mxu0 %v140_v23  ;;  %v203_v13 = vadd.f32 %v202_v5, %v188_v62 }
  0x1f   :  { %v166_v63 = vadd.f32 %v165_v60, %v539_v14 }
  0x20   :  { %238 = vmatpush.msra.mxu0 %v40_v20  ;;  %v204_v16 = vadd.f32 %v203_v13, %v189_v3  ;;  %v413_v3 = vld [vmem:[%s671_s3] ss:$0 sm:$0xff] }
  0x21   :  { %v167_v4 = vadd.f32 %v166_v63, %v528_v10  ;;  %v451_v10 = vmov 0  }
  0x22   :  { %239 = vmatpush.msra.mxu0 %v39_v21  ;;  %v205_v19 = vadd.f32 %v204_v16, %v190_v11  ;;  %411 = vset.pattern.permute.xlu0 %v451_v10 }
  0x23   :  { %405 = vmatmul.msk.f32.vlgmr.msra.gmra.mxu0 %vm220_vm1, %v450_v9  ;;  %v168_v12 = vadd.f32 %v167_v4, %v519_v8 }
  0x24   :  { %v206_v6 = vadd.f32 %v205_v19, %v191_v15  ;;  %v361_v15 = vld [vmem:[%s674_s6 + $0x78] sm:$0xff] }
  0x25   :  { %v169_v2 = vadd.f32 %v168_v12, %v517_v7  ;;  %366 = vmatpush.msra.mxu1 %v361_v15 }
  0x26   :  { %v207_v20 = vadd.f32 %v206_v6, %v192_v17  ;;  %v360_v17 = vld [vmem:[%s674_s6 + $0x70] sm:$0xff] }
  0x27   :  { %v170_v32 = vrot.slane %v169_v2, 4  ;;  %367 = vmatpush.msra.mxu1 %v360_v17 }
  0x28   :  { %v208_v21 = vadd.f32 %v207_v20, %v193_v1  ;;  %v359_v1 = vld [vmem:[%s674_s6 + $0x68] sm:$0xff]  ;;  %v358_v20 = vld [vmem:[%s674_s6 + $0x60] sm:$0xff] }
  0x29   :  { %v171_v33 = vadd.f32 %v170_v32, %v169_v2  ;;  %368 = vmatpush.msra.mxu1 %v359_v1 }
  0x2a   :  { %v209_v22 = vadd.f32 %v208_v21, %v194_v18 }
  0x2b   :  { %v172_v37 = vrot.slane %v171_v33, 2  ;;  %369 = vmatpush.msra.mxu1 %v358_v20 }
  0x2c   :  { %v210_v23 = vrot.slane %v209_v22, 4 }
  0x2d   :  { %v173_v38 = vadd.f32 %v172_v37, %v171_v33  ;;  %v350_v33 = vld [vmem:[%s674_s6 + $0x20] sm:$0xff] }
  0x2e   :  { %v211_v24 = vadd.f32 %v210_v23, %v209_v22  ;;  %v357_v22 = vld [vmem:[%s674_s6 + $0x58] sm:$0xff] }
  0x2f   :  { %v174_v39 = vrot.slane %v173_v38, 1  ;;  %370 = vmatpush.msra.mxu1 %v357_v22 }
  0x30   :  { %v212_v14 = vrot.slane %v211_v24, 2 }
  0x31   :  { %v175_v40 = vadd.f32 %v174_v39, %v173_v38  ;;  %v348_v38 = vld [vmem:[%s674_s6 + $0x10] sm:$0xff] }
  0x32   :  { %v213_v25 = vadd.f32 %v212_v14, %v211_v24  ;;  %v356_v14 = vld [vmem:[%s674_s6 + $0x50] sm:$0xff] }
  0x33   :  { %v176_v42 = vadd.f32 %v175_v40, %v154_v41  ;;  %371 = vmatpush.msra.mxu1 %v356_v14  ;;  %v347_v40 = vld [vmem:[%s674_s6 + $0x8] sm:$0xff] }
  0x34   :  { %v214_v26 = vrot.slane %v213_v25, 1 }
  0x35   :  { %177 = vst [vmem:[#allocation2] sm:$0x1] %v176_v42  ;;  %v346_v42 = vld [vmem:[%s674_s6] sm:$0xff] }
  0x36   :  { %v215_v28 = vadd.f32 %v214_v26, %v213_v25  ;;  %v355_v26 = vld [vmem:[%s674_s6 + $0x48] sm:$0xff] }
  0x37   :  { %372 = vmatpush.msra.mxu1 %v355_v26 }
  0x38   :  { %v216_v29 = vadd.f32 %v215_v28, %v178_v27 }
  0x3a   :  { %217 = vst [vmem:[#allocation3] sm:$0x1] %v216_v29  ;;  %v354_v29 = vld [vmem:[%s674_s6 + $0x40] sm:$0xff] }
  0x3b   :  { %373 = vmatpush.msra.mxu1 %v354_v29 }
  0x3c   :  { %v257_v43 = vld [vmem:[#allocation2] sm:$0x1] }
  0x3d   :  { %v258_v44 = vmul.f32 0.0625, %v257_v43 }
  0x3f   :  { %v261_v47 = vmul.f32 %v258_v44, %v258_v44  ;;  %v285_v61 = vperm.slane %v258_v44, 0 }
  0x41   :  { %v259_v45 = vld [vmem:[#allocation3] sm:$0x1] }
  0x42   :  { %v260_v46 = vmul.f32 0.0625, %v259_v45 }
  0x44   :  { %v262_v48 = vsub.f32 %v260_v46, %v261_v47 }
  0x46   :  { %v263_v49 = vmax.f32 %v262_v48, 0.0 }
  0x48   :  { %v264_v50 = vadd.f32 1e-05, %v263_v49 }
  0x4a   :  { %417 = vrsqrt.f32 %v264_v50  ;;  %vm271_vm3 = vweird.f32 %v264_v50 }
  0x4b   :  { %419 = vrcp.f32 %v452_v58 }
  0x50   :  { %v418_v51 = vpop.eup %417 }
  0x51   :  { %v266_v52 = vmul.f32 %v418_v51, %v264_v50  ;;  %vm272_vm4 = vweird.f32 %v418_v51  ;;  %v420_v62 = vpop.eup %419 }
  0x52   :  { %vm273_vm5 = vmor %vm271_vm3, %vm272_vm4  ;;  %v307_v9 = vmul.f32 4.0, %v420_v62  ;;  %vm311_vm6 = vweird.f32 %v420_v62 }
  0x53   :  { %v267_v53 = vmul.f32 %v418_v51, %v266_v52 }
  0x54   :  { %v308_v2 = vsub.f32 1.0, %v307_v9 }
  0x55   :  { %v268_v54 = vmul.f32 0.5, %v267_v53 }
  0x56   :  { %v309_v18 = vmul.f32 %v420_v62, %v308_v2 }
  0x57   :  { %v269_v55 = vsub.f32 1.5, %v268_v54  ;;  %v414_v54 = vld [vmem:[%s672_s4] ss:$0 sm:$0xff]  ;;  %s395_s4 = sshll.u32 %s676_s8, 4  ;;  %s396_s4 = int_to_ptr.hbm [resolvable:$true] %s395_s4 }
  0x58   :  { %v310_v24 = vadd.f32 %v420_v62, %v309_v18 }
  0x59   :  { %v270_v56 = vmul.f32 %v418_v51, %v269_v55 }
  0x5a   :  { %v312_v28 = vsel %vm311_vm6, %v420_v62, %v310_v24 }
  0x5b   :  { %v274_v59 = vsel %vm273_vm5, %v418_v51, %v270_v56 }
  0x5c   :  { %v276_v60 = vmul.f32 %v275_v57, %v274_v59  ;;  %v415_v57 = vld [vmem:[%s673_s5] ss:$0 sm:$0xff] }
  0x5e   :  { %v290_v5 = vperm.slane %v276_v60, 0  ;;  %v416_v60 = vld [vmem:[%s675_s7] ss:$0 sm:$0xff] }
  0x7a   :  { %v250_v8 = vpop.xlane.xlu0 %249 }
  0x7b   :  { %v251_v31 = vadd.f32 %v250_v8, %v246_v30  ;;  %v353_v30 = vld [vmem:[%s674_s6 + $0x38] sm:$0xff]  ;;  %v352_v8 = vld [vmem:[%s674_s6 + $0x30] sm:$0xff] }
  0x7c   :  { %374 = vmatpush.msra.mxu1 %v353_v30 }
  0x7d   :  { %253 = vst.msk [vmem:[#allocation5] sm:$0xf] %vm37_vm2, %v251_v31 }
  0x7e   :  { %375 = vmatpush.msra.mxu1 %v352_v8 }
  0x84   :  { %v277_v7 = vld [vmem:[#allocation5] sm:$0xf] }
  0x85   :  { %281 = vperm.xlu0 %411, %v277_v7   ;;  %v351_v7 = vld [vmem:[%s674_s6 + $0x28] sm:$0xff] }
  0x86   :  { %376 = vmatpush.msra.mxu1 %v351_v7 }
  0x88   :  { %377 = vmatpush.msra.mxu1 %v350_v33 }
  0xa0   :  { %v241_v35 = vpop.f32.mrf.mxu0 }
  0xa1   :  { %v244_v36 = vadd.f32 %v241_v35, %v223_v34  ;;  %v349_v35 = vld [vmem:[%s674_s6 + $0x18] sm:$0xff] }
  0xa2   :  { %378 = vmatpush.msra.mxu1 %v349_v35 }
  0xa3   :  { %245 = vst [vmem:[#allocation4] sm:$0xf] %v244_v36 }
  0xa4   :  { %379 = vmatpush.msra.mxu1 %v348_v38 }
  0xa6   :  { %380 = vmatpush.msra.mxu1 %v347_v40 }
  0xa8   :  { %381 = vmatpush.msra.mxu1 %v346_v42 }
  0xaa   :  { %v278_v0 = vld [vmem:[#allocation4] sm:$0xf] }
  0xf7   :  { %v282_v63 = vpop.permute.xlu0 %281 }
  0xf8   :  { %v287_v4 = vmul.f32 %v285_v61, %v282_v63  ;;  %v297_v13 = vmul.f32 %v413_v3, %v282_v63 }
  0xfa   :  { %v288_v11 = vsub.f32 %v278_v0, %v287_v4 }
  0xfc   :  { %v292_v12 = vmul.f32 %v290_v5, %v288_v11 }
  0xfe   :  { %v298_v16 = vadd.f32 %v297_v13, %v292_v12 }
 0x100   :  { %v299_v19 = vsel %vm247_vm0, %v298_v16, 0.0 }
 0x101   :  { %v300_v6 = vrot.slane %v299_v19, 4 }
 0x103   :  { %v301_v21 = vadd.f32 %v300_v6, %v299_v19 }
 0x105   :  { %v302_v23 = vrot.slane %v301_v21, 2 }
 0x107   :  { %v303_v25 = vadd.f32 %v302_v23, %v301_v21 }
 0x109   :  { %v304_v27 = vrot.slane %v303_v25, 1 }
 0x10b   :  { %v305_v10 = vadd.f32 %v304_v27, %v303_v25 }
 0x10d   :  { %v313_v31 = vmul.f32 %v312_v28, %v305_v10 }
 0x10f   :  { %v314_v32 = vsub.f32 %v298_v16, %v313_v31 }
 0x111   :  { %v315_v34 = vmul.f32 %v314_v32, %v314_v32 }
 0x113   :  { %v316_v36 = vsel %vm247_vm0, %v315_v34, 0.0 }
 0x114   :  { %v317_v37 = vrot.slane %v316_v36, 4 }
 0x116   :  { %v318_v39 = vadd.f32 %v317_v37, %v316_v36 }
 0x118   :  { %v319_v41 = vrot.slane %v318_v39, 2 }
 0x11a   :  { %v320_v43 = vadd.f32 %v319_v41, %v318_v39 }
 0x11c   :  { %v321_v44 = vrot.slane %v320_v43, 1 }
 0x11e   :  { %v322_v45 = vadd.f32 %v321_v44, %v320_v43 }
 0x120   :  { %v323_v46 = vmul.f32 %v322_v45, %v312_v28 }
 0x122   :  { %v324_v47 = vadd.f32 1e-05, %v323_v46 }
 0x124   :  { %421 = vrsqrt.f32 %v324_v47  ;;  %vm331_vm8 = vweird.f32 %v324_v47 }
 0x12a   :  { %v422_v48 = vpop.eup %421 }
 0x12b   :  { %v326_v49 = vmul.f32 %v422_v48, %v324_v47  ;;  %vm332_vm7 = vweird.f32 %v422_v48 }
 0x12c   :  { %vm333_vm9 = vmor %vm331_vm8, %vm332_vm7 }
 0x12d   :  { %v327_v50 = vmul.f32 %v422_v48, %v326_v49 }
 0x12f   :  { %v328_v51 = vmul.f32 0.5, %v327_v50 }
 0x131   :  { %v329_v52 = vsub.f32 1.5, %v328_v51 }
 0x133   :  { %v330_v53 = vmul.f32 %v422_v48, %v329_v52 }
 0x135   :  { %v334_v55 = vsel %vm333_vm9, %v422_v48, %v330_v53 }
 0x136   :  { %v335_v56 = vmul.f32 %v334_v55, %v314_v32 }
 0x138   :  { %v340_v58 = vmul.f32 %v414_v54, %v335_v56 }
 0x13a   :  { %v345_v59 = vadd.f32 %v415_v57, %v340_v58 }
 0x13c   :  { %382 = vmatmul.f32.vlgmr.msra.gmra.mxu1 %v345_v59 }
 0x1b9   :  { %v383_v61 = vpop.f32.mrf.mxu1 }
 0x1ba   :  { %v384_v62 = vadd.f32 %v416_v60, %v383_v61 }
 0x1bc   :  { %v386_v63 = vmax.f32 %v384_v62, 0.0 }
 0x1be   :  { %387 = vst [vmem:[#allocation6] sm:$0xf] %v386_v63 }
 0x1bf   :  { %398 = dma.vmem_to_hbm [thread:$0]  %s394_s28, 64, %s396_s4, [#allocation7]  }
 0x1c0   :  { %447 = dma.done.wait [#allocation7], 64  }
 0x1c1   :  { %448 = vsyncadd [#allocation7], 4294967232 }
 0x1c2   :  { %403 = vsyncpa [#allocation7], 1 }

</bundles_post_ra>
